<compile_context>
chip_gen: v6e
topology: v6e:2x2x1
jax: 0.10.0
libtpu: 0.0.40
codegen_flags: <defaults>
</compile_context>

<pallas_src>
import functools

import jax
import jax.numpy as jnp
import numpy as np
from jax import lax
from jax.experimental import pallas as pl
from jax.experimental.pallas import tpu as pltpu

NEG_SLOPE = 0.2


def _lrelu(v):
    return jnp.where(v > 0, v, NEG_SLOPE * v)


def _round_up(x, m):
    return ((x + m - 1) // m) * m


def res2block_kernel(x_ref, wtop_ref, wconv_ref, wend_ref, o_ref,
                     top_ref, cat_ref, pad_ref, patch_ref,
                     *, H, W, num, width, b_blk):
    # x_ref:     (b_blk, C, HW) f32   batch block, channels-on-sublane
    # wtop_ref:  (C, C)          bf16 1x1 "top" weight (Cout, Cin)
    # wconv_ref: (num, width, 9*width) bf16 flattened im2col 3x3 weights
    # wend_ref:  (C, C)          bf16 1x1 "end" weight (Cout, Cin)
    # o_ref:     (b_blk, C, HW)  f32
    # top_ref:   (C, HW)         f32  staging for the top activation
    # cat_ref:   (C, HW)         bf16 concatenated group outputs
    # pad_ref:   (width, PAD+HW+PAD) bf16 zero-bordered flat running sum
    # patch_ref: (9*width, HW)   bf16 im2col patches (per-tap stores)
    HW = H * W
    PAD = (pad_ref.shape[-1] - HW) // 2   # static; PAD >= W+1, lane-aligned

    # x-boundary masks for the dx = -1 / +1 taps (computed once per step).
    xx = jax.lax.broadcasted_iota(jnp.int32, (1, HW), 1) % W
    mask_l = xx >= 1             # left neighbour is valid
    mask_r = xx <= (W - 2)       # right neighbour is valid

    # Zero only the two PAD border slabs; interior is overwritten every group.
    zeros_pad = jnp.zeros((width, PAD), pad_ref.dtype)
    pad_ref[:, :PAD] = zeros_pad
    pad_ref[:, PAD + HW:] = zeros_pad

    def process_image(b, carry):
        # --- top: 1x1 conv + LeakyReLU, staged to VMEM (bounds live range) --
        x_bf = x_ref[b].astype(jnp.bfloat16)                        # (C, HW)
        top_ref[...] = _lrelu(
            jnp.dot(wtop_ref[...], x_bf, preferred_element_type=jnp.float32))

        # --- res2 group loop (num is a small static constant -> unrolled) --
        sp_out = None
        for i in range(num):
            spx_i = top_ref[i * width:(i + 1) * width, :]           # f32
            sp = spx_i if i == 0 else sp_out + spx_i                # f32 sum

            # im2col via the bf16 zero-bordered flat scratch: one lane-aligned
            # store, nine static lane-offset window reads (the zero borders
            # handle the y boundaries exactly like conv padding=1).
            pad_ref[:, PAD:PAD + HW] = sp.astype(jnp.bfloat16)
            k = 0
            for dy in (-1, 0, 1):
                for dx in (-1, 0, 1):
                    d = dy * W + dx
                    win = pad_ref[:, PAD + d:PAD + d + HW]          # bf16
                    if dx == -1:
                        win = jnp.where(mask_l, win, jnp.zeros_like(win))
                    elif dx == 1:
                        win = jnp.where(mask_r, win, jnp.zeros_like(win))
                    # Per-tap, sublane-aligned store (no 9-way value concat).
                    patch_ref[k * width:(k + 1) * width, :] = win
                    k += 1

            # One fused matmul per group: (width, 9*width) @ (9*width, HW).
            conv = jnp.dot(wconv_ref[i], patch_ref[...],
                           preferred_element_type=jnp.float32)      # f32
            sp_out = _lrelu(conv)
            cat_ref[i * width:(i + 1) * width, :] = sp_out.astype(jnp.bfloat16)

        # --- end: 1x1 conv + LeakyReLU -> lane-dense f32 store --------------
        end = _lrelu(jnp.dot(wend_ref[...], cat_ref[...],
                             preferred_element_type=jnp.float32))
        o_ref[b] = end
        return carry

    if b_blk == 1:
        process_image(0, None)
    else:
        lax.fori_loop(0, b_blk, process_image, None)


def prepare_res2block_weights(w_top, w_convs, w_end, *, width):
    """Flatten / pre-cast weights once per parameter set (hoisted out of the
    per-forward path; otherwise these are extra XLA ops on every call)."""
    wtop = jnp.asarray(w_top)[:, :, 0, 0].astype(jnp.bfloat16)        # (C, C)
    wend = jnp.asarray(w_end)[:, :, 0, 0].astype(jnp.bfloat16)        # (C, C)
    # (Cout, Cin, ky, kx) -> (Cout, ky, kx, Cin) -> (Cout, 9*Cin): the K
    # ordering matches the (dy, dx, cin) tap layout built in the kernel.
    wconv = jnp.stack(
        [jnp.transpose(jnp.asarray(w), (0, 2, 3, 1)).reshape(width, 9 * width)
         for w in w_convs], axis=0).astype(jnp.bfloat16)   # (num, w, 9*w)
    return wtop, wconv, wend


def _pick_b_blk(n):
    # Batch several images per grid step to amortize per-step overhead, but
    # keep the "parallel" grid extent >= 2 so both v7x TensorCores get work.
    if n <= 1:
        return 1
    for cand in (4, 3, 2):
        if n % cand == 0 and n // cand >= 2:
            return cand
    return 1


@functools.partial(jax.jit, static_argnames=("num", "width"))
def res2block_pallas(x_nchw, wtop, wconv, wend, *, num, width):
    """x_nchw: (N, C, H, W) float32.  wtop/wconv/wend from prepare_res2block_weights."""
    N, C, H, W = x_nchw.shape
    assert C == num * width
    HW = H * W
    b_blk = _pick_b_blk(N)
    assert N % b_blk == 0

    # NCHW maps natively onto the kernel's (C, H*W) layout; reshape is free.
    x_flat = x_nchw.reshape(N, C, HW)

    pad = _round_up(W + 1, 128)          # lane-aligned interior store
    pad_len = HW + 2 * pad

    kernel = functools.partial(res2block_kernel,
                               H=H, W=W, num=num, width=width, b_blk=b_blk)

    # Explicit VMEM budget (v5e scoped default is only 16 MiB); capped at the
    # v7x 64 MiB physical ceiling.
    vmem_bytes = (
        2 * 2 * b_blk * C * HW * 4                        # in/out blocks, 2-buf
        + C * HW * (4 + 2)                                # top (f32) + cat (bf16)
        + width * pad_len * 2 + 9 * width * HW * 2        # pad + patches (bf16)
        + 2 * (2 * C * C + num * width * 9 * width) * 2   # weights, 2-buf, bf16
    )
    vmem_limit = int(min(64 * 1024 * 1024, max(2 * vmem_bytes, 16 * 1024 * 1024)))

    out_flat = pl.pallas_call(
        kernel,
        out_shape=jax.ShapeDtypeStruct((N, C, HW), jnp.float32),
        grid_spec=pltpu.PrefetchScalarGridSpec(
            num_scalar_prefetch=0,
            grid=(N // b_blk,),
            in_specs=[
                pl.BlockSpec((b_blk, C, HW), lambda n: (n, 0, 0)),
                pl.BlockSpec((C, C), lambda n: (0, 0)),
                pl.BlockSpec((num, width, 9 * width), lambda n: (0, 0, 0)),
                pl.BlockSpec((C, C), lambda n: (0, 0)),
            ],
            out_specs=pl.BlockSpec((b_blk, C, HW), lambda n: (n, 0, 0)),
            scratch_shapes=[
                pltpu.VMEM((C, HW), jnp.float32),            # top staging (f32)
                pltpu.VMEM((C, HW), jnp.bfloat16),           # concat buffer
                pltpu.VMEM((width, pad_len), jnp.bfloat16),  # zero-bordered sp
                pltpu.VMEM((9 * width, HW), jnp.bfloat16),   # im2col patches
            ],
        ),
        compiler_params=pltpu.CompilerParams(
            dimension_semantics=("parallel",),
            vmem_limit_bytes=vmem_limit),
    )(x_flat, wtop, wconv, wend)

    return out_flat.reshape(N, C, H, W)


# ---------------------- pure-JAX reference (NCHW, mirrors PyTorch) -----------
def res2block_ref(x, w_top, w_convs, w_end, *, num, width):
    conv = functools.partial(
        jax.lax.conv_general_dilated,
        window_strides=(1, 1),
        dimension_numbers=("NCHW", "OIHW", "NCHW"),
    )
    out = _lrelu(conv(x, w_top, padding="VALID"))
    outs = []
    sp = None
    for i in range(num):
        spx_i = out[:, i * width:(i + 1) * width]
        sp = spx_i if i == 0 else sp + spx_i
        sp = _lrelu(conv(sp, w_convs[i], padding=[(1, 1), (1, 1)]))
        outs.append(sp)
    cat = jnp.concatenate(outs, axis=1)
    return _lrelu(conv(cat, w_end, padding="VALID"))


if __name__ == "__main__":
    # Module defaults (n_feats=64, num=4, width=16); H=W=16 -> HW=256 so the
    # lane axis is a multiple of 128.  N=4 exercises the batched (b_blk=2)
    # grid-step path while keeping the parallel grid extent at 2.
    N, n_feats, H, W = 4, 64, 16, 16
    num, width = 4, 16

    key = jax.random.PRNGKey(0)
    k_x, k_top, k_end, *k_convs = jax.random.split(key, 3 + num)

    x = jax.random.normal(k_x, (N, n_feats, H, W), dtype=jnp.float32)
    w_top = jax.random.normal(k_top, (n_feats, n_feats, 1, 1), jnp.float32) * 0.1
    w_end = jax.random.normal(k_end, (n_feats, n_feats, 1, 1), jnp.float32) * 0.1
    w_convs = [
        jax.random.normal(k, (width, width, 3, 3), jnp.float32) * 0.1
        for k in k_convs
    ]

    # Weight prep hoisted out of the per-call path (run once per param set).
    wtop, wconv, wend = prepare_res2block_weights(
        w_top, w_convs, w_end, width=width)

    out = res2block_pallas(x, wtop, wconv, wend, num=num, width=width)
    out = jax.block_until_ready(out)

    ref = res2block_ref(x, w_top, w_convs, w_end, num=num, width=width)
    # Tolerance loosened vs. the f32 reference because the kernel runs its
    # matmuls with bf16 MXU operands (f32 accumulation).
    np.testing.assert_allclose(np.asarray(out), np.asarray(ref),
                               rtol=2e-2, atol=5e-2)
    print("KERNEL_OK")
</pallas_src>

<mosaic_0001>
module attributes {stable_mosaic.version = 11 : i64} {
  func.func @res2block_kernel(%arg0: i32, %arg1: memref<2x64x256xf32, #tpu.memory_space<vmem>>, %arg2: memref<64x64xbf16, #tpu.memory_space<vmem>>, %arg3: memref<4x16x144xbf16, #tpu.memory_space<vmem>>, %arg4: memref<64x64xbf16, #tpu.memory_space<vmem>>, %arg5: memref<2x64x256xf32, #tpu.memory_space<vmem>>, %arg6: memref<64x256xf32, #tpu.memory_space<vmem>>, %arg7: memref<64x256xbf16, #tpu.memory_space<vmem>>, %arg8: memref<16x512xbf16, #tpu.memory_space<vmem>>, %arg9: memref<144x256xbf16, #tpu.memory_space<vmem>>) attributes {dimension_semantics = [#tpu.dimension_semantics<parallel>], iteration_bounds = array<i64: 2>, scalar_prefetch = 0 : i64, scratch_operands = 4 : i64, tpu.core_type = #tpu.core_type<tc>, window_params = [{transform_indices = @transform_0, window_bounds = array<i64: 2, 64, 256>}, {pipeline_mode = #tpu.pipeline_mode<synchronous>, transform_indices = @transform_1, window_bounds = array<i64: 64, 64>}, {pipeline_mode = #tpu.pipeline_mode<synchronous>, transform_indices = @transform_2, window_bounds = array<i64: 4, 16, 144>}, {pipeline_mode = #tpu.pipeline_mode<synchronous>, transform_indices = @transform_3, window_bounds = array<i64: 64, 64>}, {transform_indices = @transform_4, window_bounds = array<i64: 2, 64, 256>}]} {
    %0 = tpu.iota {dimensions = array<i32: 1>} : vector<1x256xi32>
    %c16_i32 = arith.constant 16 : i32
    %c0_i32 = arith.constant 0 : i32
    %1 = arith.cmpi eq, %c16_i32, %c0_i32 : i32
    %c1_i32 = arith.constant 1 : i32
    %2 = arith.select %1, %c1_i32, %c16_i32 : i32
    %3 = vector.broadcast %2 : i32 to vector<1x256xi32>
    %4 = arith.remsi %0, %3 : vector<1x256xi32>
    %c0_i32_0 = arith.constant 0 : i32
    %5 = vector.broadcast %c0_i32_0 : i32 to vector<1x256xi32>
    %6 = arith.cmpi ne, %4, %5 : vector<1x256xi32>
    %c0_i32_1 = arith.constant 0 : i32
    %7 = vector.broadcast %c0_i32_1 : i32 to vector<1x256xi32>
    %8 = arith.cmpi slt, %4, %7 : vector<1x256xi32>
    %c0_i32_2 = arith.constant 0 : i32
    %9 = arith.cmpi slt, %2, %c0_i32_2 : i32
    %10 = vector.broadcast %9 : i1 to vector<1x256xi1>
    %11 = vector.broadcast %10 : vector<1x256xi1> to vector<1x256xi1>
    %12 = arith.xori %8, %11 : vector<1x256xi1>
    %13 = arith.andi %12, %6 : vector<1x256xi1>
    %14 = vector.broadcast %2 : i32 to vector<1x256xi32>
    %15 = arith.addi %4, %14 : vector<1x256xi32>
    %16 = arith.select %13, %15, %4 : vector<1x256xi1>, vector<1x256xi32>
    %c1_i32_3 = arith.constant 1 : i32
    %17 = vector.broadcast %c1_i32_3 : i32 to vector<1x256xi32>
    %18 = arith.cmpi sge, %16, %17 : vector<1x256xi32>
    %c14_i32 = arith.constant 14 : i32
    %19 = vector.broadcast %c14_i32 : i32 to vector<1x256xi32>
    %20 = arith.cmpi sle, %16, %19 : vector<1x256xi32>
    %cst = arith.constant 0.000000e+00 : bf16
    %21 = vector.broadcast %cst : bf16 to vector<16x128xbf16>
    %c0 = arith.constant 0 : index
    %c0_4 = arith.constant 0 : index
    %22 = vector.load %arg8[%c0, %c0_4] : memref<16x512xbf16, #tpu.memory_space<vmem>>, vector<16x128xbf16>
    tpu.vector_store %arg8[%c0, %c0_4], %21 {strides = array<i32>} : memref<16x512xbf16, #tpu.memory_space<vmem>>, vector<16x128xbf16>,
    %c0_5 = arith.constant 0 : index
    %c384 = arith.constant 384 : index
    %23 = vector.load %arg8[%c0_5, %c384] : memref<16x512xbf16, #tpu.memory_space<vmem>>, vector<16x128xbf16>
    tpu.vector_store %arg8[%c0_5, %c384], %21 {strides = array<i32>} : memref<16x512xbf16, #tpu.memory_space<vmem>>, vector<16x128xbf16>,
    %c0_i32_6 = arith.constant 0 : i32
    %c2_i32 = arith.constant 2 : i32
    %24 = arith.addi %c0_i32_6, %c2_i32 : i32
    %c1_i32_7 = arith.constant 1 : i32
    scf.for %arg10 = %c0_i32_6 to %24 step %c1_i32_7  : i32 {
      %25 = arith.index_cast %arg10 : i32 to index
      %c0_9 = arith.constant 0 : index
      %c0_10 = arith.constant 0 : index
      %26 = vector.load %arg1[%25, %c0_9, %c0_10] : memref<2x64x256xf32, #tpu.memory_space<vmem>>, vector<1x64x256xf32>
      %27 = vector.shape_cast %26 : vector<1x64x256xf32> to vector<64x256xf32>
      %28 = arith.truncf %27 : vector<64x256xf32> to vector<64x256xbf16>
      %c0_11 = arith.constant 0 : index
      %c0_12 = arith.constant 0 : index
      %29 = vector.load %arg2[%c0_11, %c0_12] : memref<64x64xbf16, #tpu.memory_space<vmem>>, vector<64x64xbf16>
      %cst_13 = arith.constant dense<0.000000e+00> : vector<64x256xf32>
      %30 = tpu.matmul %29, %28, %cst_13 {dimension_numbers = #tpu.dot_dimension_numbers<[1], [0], [0], [1], [0, 0, 1, 1], [], []>} : vector<64x64xbf16>, vector<64x256xbf16>, vector<64x256xf32> -> vector<64x256xf32>
      %cst_14 = arith.constant 0.000000e+00 : f32
      %31 = vector.broadcast %cst_14 : f32 to vector<64x256xf32>
      %32 = arith.cmpf ogt, %30, %31 : vector<64x256xf32>
      %cst_15 = arith.constant 2.000000e-01 : f32
      %33 = vector.broadcast %cst_15 : f32 to vector<64x256xf32>
      %34 = arith.mulf %33, %30 : vector<64x256xf32>
      %35 = arith.select %32, %30, %34 : vector<64x256xi1>, vector<64x256xf32>
      %c0_16 = arith.constant 0 : index
      %c0_17 = arith.constant 0 : index
      %36 = vector.load %arg6[%c0_16, %c0_17] : memref<64x256xf32, #tpu.memory_space<vmem>>, vector<64x256xf32>
      tpu.vector_store %arg6[%c0_16, %c0_17], %35 {strides = array<i32>} : memref<64x256xf32, #tpu.memory_space<vmem>>, vector<64x256xf32>,
      %c0_18 = arith.constant 0 : index
      %c0_19 = arith.constant 0 : index
      %37 = vector.load %arg6[%c0_18, %c0_19] : memref<64x256xf32, #tpu.memory_space<vmem>>, vector<16x256xf32>
      %38 = arith.truncf %37 : vector<16x256xf32> to vector<16x256xbf16>
      %c0_20 = arith.constant 0 : index
      %c128 = arith.constant 128 : index
      %39 = vector.load %arg8[%c0_20, %c128] : memref<16x512xbf16, #tpu.memory_space<vmem>>, vector<16x256xbf16>
      tpu.vector_store %arg8[%c0_20, %c128], %38 {strides = array<i32>} : memref<16x512xbf16, #tpu.memory_space<vmem>>, vector<16x256xbf16>,
      %c0_21 = arith.constant 0 : index
      %c111 = arith.constant 111 : index
      %40 = vector.load %arg8[%c0_21, %c111] : memref<16x512xbf16, #tpu.memory_space<vmem>>, vector<16x256xbf16>
      %cst_22 = arith.constant 0.000000e+00 : bf16
      %41 = vector.broadcast %cst_22 : bf16 to vector<16x256xbf16>
      %42 = vector.shape_cast %18 : vector<1x256xi1> to vector<1x256xi1>
      %43 = vector.broadcast %42 : vector<1x256xi1> to vector<16x256xi1>
      %44 = arith.select %43, %40, %41 : vector<16x256xi1>, vector<16x256xbf16>
      %c0_23 = arith.constant 0 : index
      %c0_24 = arith.constant 0 : index
      %45 = vector.load %arg9[%c0_23, %c0_24] : memref<144x256xbf16, #tpu.memory_space<vmem>>, vector<16x256xbf16>
      tpu.vector_store %arg9[%c0_23, %c0_24], %44 {strides = array<i32>} : memref<144x256xbf16, #tpu.memory_space<vmem>>, vector<16x256xbf16>,
      %c0_25 = arith.constant 0 : index
      %c112 = arith.constant 112 : index
      %46 = vector.load %arg8[%c0_25, %c112] : memref<16x512xbf16, #tpu.memory_space<vmem>>, vector<16x256xbf16>
      %c16 = arith.constant 16 : index
      %c0_26 = arith.constant 0 : index
      %47 = vector.load %arg9[%c16, %c0_26] : memref<144x256xbf16, #tpu.memory_space<vmem>>, vector<16x256xbf16>
      tpu.vector_store %arg9[%c16, %c0_26], %46 {strides = array<i32>} : memref<144x256xbf16, #tpu.memory_space<vmem>>, vector<16x256xbf16>,
      %c0_27 = arith.constant 0 : index
      %c113 = arith.constant 113 : index
      %48 = vector.load %arg8[%c0_27, %c113] : memref<16x512xbf16, #tpu.memory_space<vmem>>, vector<16x256xbf16>
      %cst_28 = arith.constant 0.000000e+00 : bf16
      %49 = vector.broadcast %cst_28 : bf16 to vector<16x256xbf16>
      %50 = vector.shape_cast %20 : vector<1x256xi1> to vector<1x256xi1>
      %51 = vector.broadcast %50 : vector<1x256xi1> to vector<16x256xi1>
      %52 = arith.select %51, %48, %49 : vector<16x256xi1>, vector<16x256xbf16>
      %c32 = arith.constant 32 : index
      %c0_29 = arith.constant 0 : index
      %53 = vector.load %arg9[%c32, %c0_29] : memref<144x256xbf16, #tpu.memory_space<vmem>>, vector<16x256xbf16>
      tpu.vector_store %arg9[%c32, %c0_29], %52 {strides = array<i32>} : memref<144x256xbf16, #tpu.memory_space<vmem>>, vector<16x256xbf16>,
      %c0_30 = arith.constant 0 : index
      %c127 = arith.constant 127 : index
      %54 = vector.load %arg8[%c0_30, %c127] : memref<16x512xbf16, #tpu.memory_space<vmem>>, vector<16x256xbf16>
      %cst_31 = arith.constant 0.000000e+00 : bf16
      %55 = vector.broadcast %cst_31 : bf16 to vector<16x256xbf16>
      %56 = vector.shape_cast %18 : vector<1x256xi1> to vector<1x256xi1>
      %57 = vector.broadcast %56 : vector<1x256xi1> to vector<16x256xi1>
      %58 = arith.select %57, %54, %55 : vector<16x256xi1>, vector<16x256xbf16>
      %c48 = arith.constant 48 : index
      %c0_32 = arith.constant 0 : index
      %59 = vector.load %arg9[%c48, %c0_32] : memref<144x256xbf16, #tpu.memory_space<vmem>>, vector<16x256xbf16>
      tpu.vector_store %arg9[%c48, %c0_32], %58 {strides = array<i32>} : memref<144x256xbf16, #tpu.memory_space<vmem>>, vector<16x256xbf16>,
      %c0_33 = arith.constant 0 : index
      %c128_34 = arith.constant 128 : index
      %60 = vector.load %arg8[%c0_33, %c128_34] : memref<16x512xbf16, #tpu.memory_space<vmem>>, vector<16x256xbf16>
      %c64 = arith.constant 64 : index
      %c0_35 = arith.constant 0 : index
      %61 = vector.load %arg9[%c64, %c0_35] : memref<144x256xbf16, #tpu.memory_space<vmem>>, vector<16x256xbf16>
      tpu.vector_store %arg9[%c64, %c0_35], %60 {strides = array<i32>} : memref<144x256xbf16, #tpu.memory_space<vmem>>, vector<16x256xbf16>,
      %c0_36 = arith.constant 0 : index
      %c129 = arith.constant 129 : index
      %62 = vector.load %arg8[%c0_36, %c129] : memref<16x512xbf16, #tpu.memory_space<vmem>>, vector<16x256xbf16>
      %cst_37 = arith.constant 0.000000e+00 : bf16
      %63 = vector.broadcast %cst_37 : bf16 to vector<16x256xbf16>
      %64 = vector.shape_cast %20 : vector<1x256xi1> to vector<1x256xi1>
      %65 = vector.broadcast %64 : vector<1x256xi1> to vector<16x256xi1>
      %66 = arith.select %65, %62, %63 : vector<16x256xi1>, vector<16x256xbf16>
      %c80 = arith.constant 80 : index
      %c0_38 = arith.constant 0 : index
      %67 = vector.load %arg9[%c80, %c0_38] : memref<144x256xbf16, #tpu.memory_space<vmem>>, vector<16x256xbf16>
      tpu.vector_store %arg9[%c80, %c0_38], %66 {strides = array<i32>} : memref<144x256xbf16, #tpu.memory_space<vmem>>, vector<16x256xbf16>,
      %c0_39 = arith.constant 0 : index
      %c143 = arith.constant 143 : index
      %68 = vector.load %arg8[%c0_39, %c143] : memref<16x512xbf16, #tpu.memory_space<vmem>>, vector<16x256xbf16>
      %cst_40 = arith.constant 0.000000e+00 : bf16
      %69 = vector.broadcast %cst_40 : bf16 to vector<16x256xbf16>
      %70 = vector.shape_cast %18 : vector<1x256xi1> to vector<1x256xi1>
      %71 = vector.broadcast %70 : vector<1x256xi1> to vector<16x256xi1>
      %72 = arith.select %71, %68, %69 : vector<16x256xi1>, vector<16x256xbf16>
      %c96 = arith.constant 96 : index
      %c0_41 = arith.constant 0 : index
      %73 = vector.load %arg9[%c96, %c0_41] : memref<144x256xbf16, #tpu.memory_space<vmem>>, vector<16x256xbf16>
      tpu.vector_store %arg9[%c96, %c0_41], %72 {strides = array<i32>} : memref<144x256xbf16, #tpu.memory_space<vmem>>, vector<16x256xbf16>,
      %c0_42 = arith.constant 0 : index
      %c144 = arith.constant 144 : index
      %74 = vector.load %arg8[%c0_42, %c144] : memref<16x512xbf16, #tpu.memory_space<vmem>>, vector<16x256xbf16>
      %c112_43 = arith.constant 112 : index
      %c0_44 = arith.constant 0 : index
      %75 = vector.load %arg9[%c112_43, %c0_44] : memref<144x256xbf16, #tpu.memory_space<vmem>>, vector<16x256xbf16>
      tpu.vector_store %arg9[%c112_43, %c0_44], %74 {strides = array<i32>} : memref<144x256xbf16, #tpu.memory_space<vmem>>, vector<16x256xbf16>,
      %c0_45 = arith.constant 0 : index
      %c145 = arith.constant 145 : index
      %76 = vector.load %arg8[%c0_45, %c145] : memref<16x512xbf16, #tpu.memory_space<vmem>>, vector<16x256xbf16>
      %cst_46 = arith.constant 0.000000e+00 : bf16
      %77 = vector.broadcast %cst_46 : bf16 to vector<16x256xbf16>
      %78 = vector.shape_cast %20 : vector<1x256xi1> to vector<1x256xi1>
      %79 = vector.broadcast %78 : vector<1x256xi1> to vector<16x256xi1>
      %80 = arith.select %79, %76, %77 : vector<16x256xi1>, vector<16x256xbf16>
      %c128_47 = arith.constant 128 : index
      %c0_48 = arith.constant 0 : index
      %81 = vector.load %arg9[%c128_47, %c0_48] : memref<144x256xbf16, #tpu.memory_space<vmem>>, vector<16x256xbf16>
      tpu.vector_store %arg9[%c128_47, %c0_48], %80 {strides = array<i32>} : memref<144x256xbf16, #tpu.memory_space<vmem>>, vector<16x256xbf16>,
      %c0_49 = arith.constant 0 : index
      %c0_50 = arith.constant 0 : index
      %c0_51 = arith.constant 0 : index
      %82 = vector.load %arg3[%c0_49, %c0_50, %c0_51] : memref<4x16x144xbf16, #tpu.memory_space<vmem>>, vector<1x16x144xbf16>
      %83 = vector.shape_cast %82 : vector<1x16x144xbf16> to vector<16x144xbf16>
      %c0_52 = arith.constant 0 : index
      %c0_53 = arith.constant 0 : index
      %84 = vector.load %arg9[%c0_52, %c0_53] : memref<144x256xbf16, #tpu.memory_space<vmem>>, vector<144x256xbf16>
      %cst_54 = arith.constant dense<0.000000e+00> : vector<16x256xf32>
      %85 = tpu.matmul %83, %84, %cst_54 {dimension_numbers = #tpu.dot_dimension_numbers<[1], [0], [0], [1], [0, 0, 1, 1], [], []>} : vector<16x144xbf16>, vector<144x256xbf16>, vector<16x256xf32> -> vector<16x256xf32>
      %cst_55 = arith.constant 0.000000e+00 : f32
      %86 = vector.broadcast %cst_55 : f32 to vector<16x256xf32>
      %87 = arith.cmpf ogt, %85, %86 : vector<16x256xf32>
      %cst_56 = arith.constant 2.000000e-01 : f32
      %88 = vector.broadcast %cst_56 : f32 to vector<16x256xf32>
      %89 = arith.mulf %88, %85 : vector<16x256xf32>
      %90 = arith.select %87, %85, %89 : vector<16x256xi1>, vector<16x256xf32>
      %91 = arith.truncf %90 : vector<16x256xf32> to vector<16x256xbf16>
      %c0_57 = arith.constant 0 : index
      %c0_58 = arith.constant 0 : index
      %92 = vector.load %arg7[%c0_57, %c0_58] : memref<64x256xbf16, #tpu.memory_space<vmem>>, vector<16x256xbf16>
      tpu.vector_store %arg7[%c0_57, %c0_58], %91 {strides = array<i32>} : memref<64x256xbf16, #tpu.memory_space<vmem>>, vector<16x256xbf16>,
      %c16_59 = arith.constant 16 : index
      %c0_60 = arith.constant 0 : index
      %93 = vector.load %arg6[%c16_59, %c0_60] : memref<64x256xf32, #tpu.memory_space<vmem>>, vector<16x256xf32>
      %94 = arith.addf %90, %93 : vector<16x256xf32>
      %95 = arith.truncf %94 : vector<16x256xf32> to vector<16x256xbf16>
      %c0_61 = arith.constant 0 : index
      %c128_62 = arith.constant 128 : index
      %96 = vector.load %arg8[%c0_61, %c128_62] : memref<16x512xbf16, #tpu.memory_space<vmem>>, vector<16x256xbf16>
      tpu.vector_store %arg8[%c0_61, %c128_62], %95 {strides = array<i32>} : memref<16x512xbf16, #tpu.memory_space<vmem>>, vector<16x256xbf16>,
      %c0_63 = arith.constant 0 : index
      %c111_64 = arith.constant 111 : index
      %97 = vector.load %arg8[%c0_63, %c111_64] : memref<16x512xbf16, #tpu.memory_space<vmem>>, vector<16x256xbf16>
      %cst_65 = arith.constant 0.000000e+00 : bf16
      %98 = vector.broadcast %cst_65 : bf16 to vector<16x256xbf16>
      %99 = vector.shape_cast %18 : vector<1x256xi1> to vector<1x256xi1>
      %100 = vector.broadcast %99 : vector<1x256xi1> to vector<16x256xi1>
      %101 = arith.select %100, %97, %98 : vector<16x256xi1>, vector<16x256xbf16>
      %c0_66 = arith.constant 0 : index
      %c0_67 = arith.constant 0 : index
      %102 = vector.load %arg9[%c0_66, %c0_67] : memref<144x256xbf16, #tpu.memory_space<vmem>>, vector<16x256xbf16>
      tpu.vector_store %arg9[%c0_66, %c0_67], %101 {strides = array<i32>} : memref<144x256xbf16, #tpu.memory_space<vmem>>, vector<16x256xbf16>,
      %c0_68 = arith.constant 0 : index
      %c112_69 = arith.constant 112 : index
      %103 = vector.load %arg8[%c0_68, %c112_69] : memref<16x512xbf16, #tpu.memory_space<vmem>>, vector<16x256xbf16>
      %c16_70 = arith.constant 16 : index
      %c0_71 = arith.constant 0 : index
      %104 = vector.load %arg9[%c16_70, %c0_71] : memref<144x256xbf16, #tpu.memory_space<vmem>>, vector<16x256xbf16>
      tpu.vector_store %arg9[%c16_70, %c0_71], %103 {strides = array<i32>} : memref<144x256xbf16, #tpu.memory_space<vmem>>, vector<16x256xbf16>,
      %c0_72 = arith.constant 0 : index
      %c113_73 = arith.constant 113 : index
      %105 = vector.load %arg8[%c0_72, %c113_73] : memref<16x512xbf16, #tpu.memory_space<vmem>>, vector<16x256xbf16>
      %cst_74 = arith.constant 0.000000e+00 : bf16
      %106 = vector.broadcast %cst_74 : bf16 to vector<16x256xbf16>
      %107 = vector.shape_cast %20 : vector<1x256xi1> to vector<1x256xi1>
      %108 = vector.broadcast %107 : vector<1x256xi1> to vector<16x256xi1>
      %109 = arith.select %108, %105, %106 : vector<16x256xi1>, vector<16x256xbf16>
      %c32_75 = arith.constant 32 : index
      %c0_76 = arith.constant 0 : index
      %110 = vector.load %arg9[%c32_75, %c0_76] : memref<144x256xbf16, #tpu.memory_space<vmem>>, vector<16x256xbf16>
      tpu.vector_store %arg9[%c32_75, %c0_76], %109 {strides = array<i32>} : memref<144x256xbf16, #tpu.memory_space<vmem>>, vector<16x256xbf16>,
      %c0_77 = arith.constant 0 : index
      %c127_78 = arith.constant 127 : index
      %111 = vector.load %arg8[%c0_77, %c127_78] : memref<16x512xbf16, #tpu.memory_space<vmem>>, vector<16x256xbf16>
      %cst_79 = arith.constant 0.000000e+00 : bf16
      %112 = vector.broadcast %cst_79 : bf16 to vector<16x256xbf16>
      %113 = vector.shape_cast %18 : vector<1x256xi1> to vector<1x256xi1>
      %114 = vector.broadcast %113 : vector<1x256xi1> to vector<16x256xi1>
      %115 = arith.select %114, %111, %112 : vector<16x256xi1>, vector<16x256xbf16>
      %c48_80 = arith.constant 48 : index
      %c0_81 = arith.constant 0 : index
      %116 = vector.load %arg9[%c48_80, %c0_81] : memref<144x256xbf16, #tpu.memory_space<vmem>>, vector<16x256xbf16>
      tpu.vector_store %arg9[%c48_80, %c0_81], %115 {strides = array<i32>} : memref<144x256xbf16, #tpu.memory_space<vmem>>, vector<16x256xbf16>,
      %c0_82 = arith.constant 0 : index
      %c128_83 = arith.constant 128 : index
      %117 = vector.load %arg8[%c0_82, %c128_83] : memref<16x512xbf16, #tpu.memory_space<vmem>>, vector<16x256xbf16>
      %c64_84 = arith.constant 64 : index
      %c0_85 = arith.constant 0 : index
      %118 = vector.load %arg9[%c64_84, %c0_85] : memref<144x256xbf16, #tpu.memory_space<vmem>>, vector<16x256xbf16>
      tpu.vector_store %arg9[%c64_84, %c0_85], %117 {strides = array<i32>} : memref<144x256xbf16, #tpu.memory_space<vmem>>, vector<16x256xbf16>,
      %c0_86 = arith.constant 0 : index
      %c129_87 = arith.constant 129 : index
      %119 = vector.load %arg8[%c0_86, %c129_87] : memref<16x512xbf16, #tpu.memory_space<vmem>>, vector<16x256xbf16>
      %cst_88 = arith.constant 0.000000e+00 : bf16
      %120 = vector.broadcast %cst_88 : bf16 to vector<16x256xbf16>
      %121 = vector.shape_cast %20 : vector<1x256xi1> to vector<1x256xi1>
      %122 = vector.broadcast %121 : vector<1x256xi1> to vector<16x256xi1>
      %123 = arith.select %122, %119, %120 : vector<16x256xi1>, vector<16x256xbf16>
      %c80_89 = arith.constant 80 : index
      %c0_90 = arith.constant 0 : index
      %124 = vector.load %arg9[%c80_89, %c0_90] : memref<144x256xbf16, #tpu.memory_space<vmem>>, vector<16x256xbf16>
      tpu.vector_store %arg9[%c80_89, %c0_90], %123 {strides = array<i32>} : memref<144x256xbf16, #tpu.memory_space<vmem>>, vector<16x256xbf16>,
      %c0_91 = arith.constant 0 : index
      %c143_92 = arith.constant 143 : index
      %125 = vector.load %arg8[%c0_91, %c143_92] : memref<16x512xbf16, #tpu.memory_space<vmem>>, vector<16x256xbf16>
      %cst_93 = arith.constant 0.000000e+00 : bf16
      %126 = vector.broadcast %cst_93 : bf16 to vector<16x256xbf16>
      %127 = vector.shape_cast %18 : vector<1x256xi1> to vector<1x256xi1>
      %128 = vector.broadcast %127 : vector<1x256xi1> to vector<16x256xi1>
      %129 = arith.select %128, %125, %126 : vector<16x256xi1>, vector<16x256xbf16>
      %c96_94 = arith.constant 96 : index
      %c0_95 = arith.constant 0 : index
      %130 = vector.load %arg9[%c96_94, %c0_95] : memref<144x256xbf16, #tpu.memory_space<vmem>>, vector<16x256xbf16>
      tpu.vector_store %arg9[%c96_94, %c0_95], %129 {strides = array<i32>} : memref<144x256xbf16, #tpu.memory_space<vmem>>, vector<16x256xbf16>,
      %c0_96 = arith.constant 0 : index
      %c144_97 = arith.constant 144 : index
      %131 = vector.load %arg8[%c0_96, %c144_97] : memref<16x512xbf16, #tpu.memory_space<vmem>>, vector<16x256xbf16>
      %c112_98 = arith.constant 112 : index
      %c0_99 = arith.constant 0 : index
      %132 = vector.load %arg9[%c112_98, %c0_99] : memref<144x256xbf16, #tpu.memory_space<vmem>>, vector<16x256xbf16>
      tpu.vector_store %arg9[%c112_98, %c0_99], %131 {strides = array<i32>} : memref<144x256xbf16, #tpu.memory_space<vmem>>, vector<16x256xbf16>,
      %c0_100 = arith.constant 0 : index
      %c145_101 = arith.constant 145 : index
      %133 = vector.load %arg8[%c0_100, %c145_101] : memref<16x512xbf16, #tpu.memory_space<vmem>>, vector<16x256xbf16>
      %cst_102 = arith.constant 0.000000e+00 : bf16
      %134 = vector.broadcast %cst_102 : bf16 to vector<16x256xbf16>
      %135 = vector.shape_cast %20 : vector<1x256xi1> to vector<1x256xi1>
      %136 = vector.broadcast %135 : vector<1x256xi1> to vector<16x256xi1>
      %137 = arith.select %136, %133, %134 : vector<16x256xi1>, vector<16x256xbf16>
      %c128_103 = arith.constant 128 : index
      %c0_104 = arith.constant 0 : index
      %138 = vector.load %arg9[%c128_103, %c0_104] : memref<144x256xbf16, #tpu.memory_space<vmem>>, vector<16x256xbf16>
      tpu.vector_store %arg9[%c128_103, %c0_104], %137 {strides = array<i32>} : memref<144x256xbf16, #tpu.memory_space<vmem>>, vector<16x256xbf16>,
      %c1 = arith.constant 1 : index
      %c0_105 = arith.constant 0 : index
      %c0_106 = arith.constant 0 : index
      %139 = vector.load %arg3[%c1, %c0_105, %c0_106] : memref<4x16x144xbf16, #tpu.memory_space<vmem>>, vector<1x16x144xbf16>
      %140 = vector.shape_cast %139 : vector<1x16x144xbf16> to vector<16x144xbf16>
      %c0_107 = arith.constant 0 : index
      %c0_108 = arith.constant 0 : index
      %141 = vector.load %arg9[%c0_107, %c0_108] : memref<144x256xbf16, #tpu.memory_space<vmem>>, vector<144x256xbf16>
      %cst_109 = arith.constant dense<0.000000e+00> : vector<16x256xf32>
      %142 = tpu.matmul %140, %141, %cst_109 {dimension_numbers = #tpu.dot_dimension_numbers<[1], [0], [0], [1], [0, 0, 1, 1], [], []>} : vector<16x144xbf16>, vector<144x256xbf16>, vector<16x256xf32> -> vector<16x256xf32>
      %cst_110 = arith.constant 0.000000e+00 : f32
      %143 = vector.broadcast %cst_110 : f32 to vector<16x256xf32>
      %144 = arith.cmpf ogt, %142, %143 : vector<16x256xf32>
      %cst_111 = arith.constant 2.000000e-01 : f32
      %145 = vector.broadcast %cst_111 : f32 to vector<16x256xf32>
      %146 = arith.mulf %145, %142 : vector<16x256xf32>
      %147 = arith.select %144, %142, %146 : vector<16x256xi1>, vector<16x256xf32>
      %148 = arith.truncf %147 : vector<16x256xf32> to vector<16x256xbf16>
      %c16_112 = arith.constant 16 : index
      %c0_113 = arith.constant 0 : index
      %149 = vector.load %arg7[%c16_112, %c0_113] : memref<64x256xbf16, #tpu.memory_space<vmem>>, vector<16x256xbf16>
      tpu.vector_store %arg7[%c16_112, %c0_113], %148 {strides = array<i32>} : memref<64x256xbf16, #tpu.memory_space<vmem>>, vector<16x256xbf16>,
      %c32_114 = arith.constant 32 : index
      %c0_115 = arith.constant 0 : index
      %150 = vector.load %arg6[%c32_114, %c0_115] : memref<64x256xf32, #tpu.memory_space<vmem>>, vector<16x256xf32>
      %151 = arith.addf %147, %150 : vector<16x256xf32>
      %152 = arith.truncf %151 : vector<16x256xf32> to vector<16x256xbf16>
      %c0_116 = arith.constant 0 : index
      %c128_117 = arith.constant 128 : index
      %153 = vector.load %arg8[%c0_116, %c128_117] : memref<16x512xbf16, #tpu.memory_space<vmem>>, vector<16x256xbf16>
      tpu.vector_store %arg8[%c0_116, %c128_117], %152 {strides = array<i32>} : memref<16x512xbf16, #tpu.memory_space<vmem>>, vector<16x256xbf16>,
      %c0_118 = arith.constant 0 : index
      %c111_119 = arith.constant 111 : index
      %154 = vector.load %arg8[%c0_118, %c111_119] : memref<16x512xbf16, #tpu.memory_space<vmem>>, vector<16x256xbf16>
      %cst_120 = arith.constant 0.000000e+00 : bf16
      %155 = vector.broadcast %cst_120 : bf16 to vector<16x256xbf16>
      %156 = vector.shape_cast %18 : vector<1x256xi1> to vector<1x256xi1>
      %157 = vector.broadcast %156 : vector<1x256xi1> to vector<16x256xi1>
      %158 = arith.select %157, %154, %155 : vector<16x256xi1>, vector<16x256xbf16>
      %c0_121 = arith.constant 0 : index
      %c0_122 = arith.constant 0 : index
      %159 = vector.load %arg9[%c0_121, %c0_122] : memref<144x256xbf16, #tpu.memory_space<vmem>>, vector<16x256xbf16>
      tpu.vector_store %arg9[%c0_121, %c0_122], %158 {strides = array<i32>} : memref<144x256xbf16, #tpu.memory_space<vmem>>, vector<16x256xbf16>,
      %c0_123 = arith.constant 0 : index
      %c112_124 = arith.constant 112 : index
      %160 = vector.load %arg8[%c0_123, %c112_124] : memref<16x512xbf16, #tpu.memory_space<vmem>>, vector<16x256xbf16>
      %c16_125 = arith.constant 16 : index
      %c0_126 = arith.constant 0 : index
      %161 = vector.load %arg9[%c16_125, %c0_126] : memref<144x256xbf16, #tpu.memory_space<vmem>>, vector<16x256xbf16>
      tpu.vector_store %arg9[%c16_125, %c0_126], %160 {strides = array<i32>} : memref<144x256xbf16, #tpu.memory_space<vmem>>, vector<16x256xbf16>,
      %c0_127 = arith.constant 0 : index
      %c113_128 = arith.constant 113 : index
      %162 = vector.load %arg8[%c0_127, %c113_128] : memref<16x512xbf16, #tpu.memory_space<vmem>>, vector<16x256xbf16>
      %cst_129 = arith.constant 0.000000e+00 : bf16
      %163 = vector.broadcast %cst_129 : bf16 to vector<16x256xbf16>
      %164 = vector.shape_cast %20 : vector<1x256xi1> to vector<1x256xi1>
      %165 = vector.broadcast %164 : vector<1x256xi1> to vector<16x256xi1>
      %166 = arith.select %165, %162, %163 : vector<16x256xi1>, vector<16x256xbf16>
      %c32_130 = arith.constant 32 : index
      %c0_131 = arith.constant 0 : index
      %167 = vector.load %arg9[%c32_130, %c0_131] : memref<144x256xbf16, #tpu.memory_space<vmem>>, vector<16x256xbf16>
      tpu.vector_store %arg9[%c32_130, %c0_131], %166 {strides = array<i32>} : memref<144x256xbf16, #tpu.memory_space<vmem>>, vector<16x256xbf16>,
      %c0_132 = arith.constant 0 : index
      %c127_133 = arith.constant 127 : index
      %168 = vector.load %arg8[%c0_132, %c127_133] : memref<16x512xbf16, #tpu.memory_space<vmem>>, vector<16x256xbf16>
      %cst_134 = arith.constant 0.000000e+00 : bf16
      %169 = vector.broadcast %cst_134 : bf16 to vector<16x256xbf16>
      %170 = vector.shape_cast %18 : vector<1x256xi1> to vector<1x256xi1>
      %171 = vector.broadcast %170 : vector<1x256xi1> to vector<16x256xi1>
      %172 = arith.select %171, %168, %169 : vector<16x256xi1>, vector<16x256xbf16>
      %c48_135 = arith.constant 48 : index
      %c0_136 = arith.constant 0 : index
      %173 = vector.load %arg9[%c48_135, %c0_136] : memref<144x256xbf16, #tpu.memory_space<vmem>>, vector<16x256xbf16>
      tpu.vector_store %arg9[%c48_135, %c0_136], %172 {strides = array<i32>} : memref<144x256xbf16, #tpu.memory_space<vmem>>, vector<16x256xbf16>,
      %c0_137 = arith.constant 0 : index
      %c128_138 = arith.constant 128 : index
      %174 = vector.load %arg8[%c0_137, %c128_138] : memref<16x512xbf16, #tpu.memory_space<vmem>>, vector<16x256xbf16>
      %c64_139 = arith.constant 64 : index
      %c0_140 = arith.constant 0 : index
      %175 = vector.load %arg9[%c64_139, %c0_140] : memref<144x256xbf16, #tpu.memory_space<vmem>>, vector<16x256xbf16>
      tpu.vector_store %arg9[%c64_139, %c0_140], %174 {strides = array<i32>} : memref<144x256xbf16, #tpu.memory_space<vmem>>, vector<16x256xbf16>,
      %c0_141 = arith.constant 0 : index
      %c129_142 = arith.constant 129 : index
      %176 = vector.load %arg8[%c0_141, %c129_142] : memref<16x512xbf16, #tpu.memory_space<vmem>>, vector<16x256xbf16>
      %cst_143 = arith.constant 0.000000e+00 : bf16
      %177 = vector.broadcast %cst_143 : bf16 to vector<16x256xbf16>
      %178 = vector.shape_cast %20 : vector<1x256xi1> to vector<1x256xi1>
      %179 = vector.broadcast %178 : vector<1x256xi1> to vector<16x256xi1>
      %180 = arith.select %179, %176, %177 : vector<16x256xi1>, vector<16x256xbf16>
      %c80_144 = arith.constant 80 : index
      %c0_145 = arith.constant 0 : index
      %181 = vector.load %arg9[%c80_144, %c0_145] : memref<144x256xbf16, #tpu.memory_space<vmem>>, vector<16x256xbf16>
      tpu.vector_store %arg9[%c80_144, %c0_145], %180 {strides = array<i32>} : memref<144x256xbf16, #tpu.memory_space<vmem>>, vector<16x256xbf16>,
      %c0_146 = arith.constant 0 : index
      %c143_147 = arith.constant 143 : index
      %182 = vector.load %arg8[%c0_146, %c143_147] : memref<16x512xbf16, #tpu.memory_space<vmem>>, vector<16x256xbf16>
      %cst_148 = arith.constant 0.000000e+00 : bf16
      %183 = vector.broadcast %cst_148 : bf16 to vector<16x256xbf16>
      %184 = vector.shape_cast %18 : vector<1x256xi1> to vector<1x256xi1>
      %185 = vector.broadcast %184 : vector<1x256xi1> to vector<16x256xi1>
      %186 = arith.select %185, %182, %183 : vector<16x256xi1>, vector<16x256xbf16>
      %c96_149 = arith.constant 96 : index
      %c0_150 = arith.constant 0 : index
      %187 = vector.load %arg9[%c96_149, %c0_150] : memref<144x256xbf16, #tpu.memory_space<vmem>>, vector<16x256xbf16>
      tpu.vector_store %arg9[%c96_149, %c0_150], %186 {strides = array<i32>} : memref<144x256xbf16, #tpu.memory_space<vmem>>, vector<16x256xbf16>,
      %c0_151 = arith.constant 0 : index
      %c144_152 = arith.constant 144 : index
      %188 = vector.load %arg8[%c0_151, %c144_152] : memref<16x512xbf16, #tpu.memory_space<vmem>>, vector<16x256xbf16>
      %c112_153 = arith.constant 112 : index
      %c0_154 = arith.constant 0 : index
      %189 = vector.load %arg9[%c112_153, %c0_154] : memref<144x256xbf16, #tpu.memory_space<vmem>>, vector<16x256xbf16>
      tpu.vector_store %arg9[%c112_153, %c0_154], %188 {strides = array<i32>} : memref<144x256xbf16, #tpu.memory_space<vmem>>, vector<16x256xbf16>,
      %c0_155 = arith.constant 0 : index
      %c145_156 = arith.constant 145 : index
      %190 = vector.load %arg8[%c0_155, %c145_156] : memref<16x512xbf16, #tpu.memory_space<vmem>>, vector<16x256xbf16>
      %cst_157 = arith.constant 0.000000e+00 : bf16
      %191 = vector.broadcast %cst_157 : bf16 to vector<16x256xbf16>
      %192 = vector.shape_cast %20 : vector<1x256xi1> to vector<1x256xi1>
      %193 = vector.broadcast %192 : vector<1x256xi1> to vector<16x256xi1>
      %194 = arith.select %193, %190, %191 : vector<16x256xi1>, vector<16x256xbf16>
      %c128_158 = arith.constant 128 : index
      %c0_159 = arith.constant 0 : index
      %195 = vector.load %arg9[%c128_158, %c0_159] : memref<144x256xbf16, #tpu.memory_space<vmem>>, vector<16x256xbf16>
      tpu.vector_store %arg9[%c128_158, %c0_159], %194 {strides = array<i32>} : memref<144x256xbf16, #tpu.memory_space<vmem>>, vector<16x256xbf16>,
      %c2 = arith.constant 2 : index
      %c0_160 = arith.constant 0 : index
      %c0_161 = arith.constant 0 : index
      %196 = vector.load %arg3[%c2, %c0_160, %c0_161] : memref<4x16x144xbf16, #tpu.memory_space<vmem>>, vector<1x16x144xbf16>
      %197 = vector.shape_cast %196 : vector<1x16x144xbf16> to vector<16x144xbf16>
      %c0_162 = arith.constant 0 : index
      %c0_163 = arith.constant 0 : index
      %198 = vector.load %arg9[%c0_162, %c0_163] : memref<144x256xbf16, #tpu.memory_space<vmem>>, vector<144x256xbf16>
      %cst_164 = arith.constant dense<0.000000e+00> : vector<16x256xf32>
      %199 = tpu.matmul %197, %198, %cst_164 {dimension_numbers = #tpu.dot_dimension_numbers<[1], [0], [0], [1], [0, 0, 1, 1], [], []>} : vector<16x144xbf16>, vector<144x256xbf16>, vector<16x256xf32> -> vector<16x256xf32>
      %cst_165 = arith.constant 0.000000e+00 : f32
      %200 = vector.broadcast %cst_165 : f32 to vector<16x256xf32>
      %201 = arith.cmpf ogt, %199, %200 : vector<16x256xf32>
      %cst_166 = arith.constant 2.000000e-01 : f32
      %202 = vector.broadcast %cst_166 : f32 to vector<16x256xf32>
      %203 = arith.mulf %202, %199 : vector<16x256xf32>
      %204 = arith.select %201, %199, %203 : vector<16x256xi1>, vector<16x256xf32>
      %205 = arith.truncf %204 : vector<16x256xf32> to vector<16x256xbf16>
      %c32_167 = arith.constant 32 : index
      %c0_168 = arith.constant 0 : index
      %206 = vector.load %arg7[%c32_167, %c0_168] : memref<64x256xbf16, #tpu.memory_space<vmem>>, vector<16x256xbf16>
      tpu.vector_store %arg7[%c32_167, %c0_168], %205 {strides = array<i32>} : memref<64x256xbf16, #tpu.memory_space<vmem>>, vector<16x256xbf16>,
      %c48_169 = arith.constant 48 : index
      %c0_170 = arith.constant 0 : index
      %207 = vector.load %arg6[%c48_169, %c0_170] : memref<64x256xf32, #tpu.memory_space<vmem>>, vector<16x256xf32>
      %208 = arith.addf %204, %207 : vector<16x256xf32>
      %209 = arith.truncf %208 : vector<16x256xf32> to vector<16x256xbf16>
      %c0_171 = arith.constant 0 : index
      %c128_172 = arith.constant 128 : index
      %210 = vector.load %arg8[%c0_171, %c128_172] : memref<16x512xbf16, #tpu.memory_space<vmem>>, vector<16x256xbf16>
      tpu.vector_store %arg8[%c0_171, %c128_172], %209 {strides = array<i32>} : memref<16x512xbf16, #tpu.memory_space<vmem>>, vector<16x256xbf16>,
      %c0_173 = arith.constant 0 : index
      %c111_174 = arith.constant 111 : index
      %211 = vector.load %arg8[%c0_173, %c111_174] : memref<16x512xbf16, #tpu.memory_space<vmem>>, vector<16x256xbf16>
      %cst_175 = arith.constant 0.000000e+00 : bf16
      %212 = vector.broadcast %cst_175 : bf16 to vector<16x256xbf16>
      %213 = vector.shape_cast %18 : vector<1x256xi1> to vector<1x256xi1>
      %214 = vector.broadcast %213 : vector<1x256xi1> to vector<16x256xi1>
      %215 = arith.select %214, %211, %212 : vector<16x256xi1>, vector<16x256xbf16>
      %c0_176 = arith.constant 0 : index
      %c0_177 = arith.constant 0 : index
      %216 = vector.load %arg9[%c0_176, %c0_177] : memref<144x256xbf16, #tpu.memory_space<vmem>>, vector<16x256xbf16>
      tpu.vector_store %arg9[%c0_176, %c0_177], %215 {strides = array<i32>} : memref<144x256xbf16, #tpu.memory_space<vmem>>, vector<16x256xbf16>,
      %c0_178 = arith.constant 0 : index
      %c112_179 = arith.constant 112 : index
      %217 = vector.load %arg8[%c0_178, %c112_179] : memref<16x512xbf16, #tpu.memory_space<vmem>>, vector<16x256xbf16>
      %c16_180 = arith.constant 16 : index
      %c0_181 = arith.constant 0 : index
      %218 = vector.load %arg9[%c16_180, %c0_181] : memref<144x256xbf16, #tpu.memory_space<vmem>>, vector<16x256xbf16>
      tpu.vector_store %arg9[%c16_180, %c0_181], %217 {strides = array<i32>} : memref<144x256xbf16, #tpu.memory_space<vmem>>, vector<16x256xbf16>,
      %c0_182 = arith.constant 0 : index
      %c113_183 = arith.constant 113 : index
      %219 = vector.load %arg8[%c0_182, %c113_183] : memref<16x512xbf16, #tpu.memory_space<vmem>>, vector<16x256xbf16>
      %cst_184 = arith.constant 0.000000e+00 : bf16
      %220 = vector.broadcast %cst_184 : bf16 to vector<16x256xbf16>
      %221 = vector.shape_cast %20 : vector<1x256xi1> to vector<1x256xi1>
      %222 = vector.broadcast %221 : vector<1x256xi1> to vector<16x256xi1>
      %223 = arith.select %222, %219, %220 : vector<16x256xi1>, vector<16x256xbf16>
      %c32_185 = arith.constant 32 : index
      %c0_186 = arith.constant 0 : index
      %224 = vector.load %arg9[%c32_185, %c0_186] : memref<144x256xbf16, #tpu.memory_space<vmem>>, vector<16x256xbf16>
      tpu.vector_store %arg9[%c32_185, %c0_186], %223 {strides = array<i32>} : memref<144x256xbf16, #tpu.memory_space<vmem>>, vector<16x256xbf16>,
      %c0_187 = arith.constant 0 : index
      %c127_188 = arith.constant 127 : index
      %225 = vector.load %arg8[%c0_187, %c127_188] : memref<16x512xbf16, #tpu.memory_space<vmem>>, vector<16x256xbf16>
      %cst_189 = arith.constant 0.000000e+00 : bf16
      %226 = vector.broadcast %cst_189 : bf16 to vector<16x256xbf16>
      %227 = vector.shape_cast %18 : vector<1x256xi1> to vector<1x256xi1>
      %228 = vector.broadcast %227 : vector<1x256xi1> to vector<16x256xi1>
      %229 = arith.select %228, %225, %226 : vector<16x256xi1>, vector<16x256xbf16>
      %c48_190 = arith.constant 48 : index
      %c0_191 = arith.constant 0 : index
      %230 = vector.load %arg9[%c48_190, %c0_191] : memref<144x256xbf16, #tpu.memory_space<vmem>>, vector<16x256xbf16>
      tpu.vector_store %arg9[%c48_190, %c0_191], %229 {strides = array<i32>} : memref<144x256xbf16, #tpu.memory_space<vmem>>, vector<16x256xbf16>,
      %c0_192 = arith.constant 0 : index
      %c128_193 = arith.constant 128 : index
      %231 = vector.load %arg8[%c0_192, %c128_193] : memref<16x512xbf16, #tpu.memory_space<vmem>>, vector<16x256xbf16>
      %c64_194 = arith.constant 64 : index
      %c0_195 = arith.constant 0 : index
      %232 = vector.load %arg9[%c64_194, %c0_195] : memref<144x256xbf16, #tpu.memory_space<vmem>>, vector<16x256xbf16>
      tpu.vector_store %arg9[%c64_194, %c0_195], %231 {strides = array<i32>} : memref<144x256xbf16, #tpu.memory_space<vmem>>, vector<16x256xbf16>,
      %c0_196 = arith.constant 0 : index
      %c129_197 = arith.constant 129 : index
      %233 = vector.load %arg8[%c0_196, %c129_197] : memref<16x512xbf16, #tpu.memory_space<vmem>>, vector<16x256xbf16>
      %cst_198 = arith.constant 0.000000e+00 : bf16
      %234 = vector.broadcast %cst_198 : bf16 to vector<16x256xbf16>
      %235 = vector.shape_cast %20 : vector<1x256xi1> to vector<1x256xi1>
      %236 = vector.broadcast %235 : vector<1x256xi1> to vector<16x256xi1>
      %237 = arith.select %236, %233, %234 : vector<16x256xi1>, vector<16x256xbf16>
      %c80_199 = arith.constant 80 : index
      %c0_200 = arith.constant 0 : index
      %238 = vector.load %arg9[%c80_199, %c0_200] : memref<144x256xbf16, #tpu.memory_space<vmem>>, vector<16x256xbf16>
      tpu.vector_store %arg9[%c80_199, %c0_200], %237 {strides = array<i32>} : memref<144x256xbf16, #tpu.memory_space<vmem>>, vector<16x256xbf16>,
      %c0_201 = arith.constant 0 : index
      %c143_202 = arith.constant 143 : index
      %239 = vector.load %arg8[%c0_201, %c143_202] : memref<16x512xbf16, #tpu.memory_space<vmem>>, vector<16x256xbf16>
      %cst_203 = arith.constant 0.000000e+00 : bf16
      %240 = vector.broadcast %cst_203 : bf16 to vector<16x256xbf16>
      %241 = vector.shape_cast %18 : vector<1x256xi1> to vector<1x256xi1>
      %242 = vector.broadcast %241 : vector<1x256xi1> to vector<16x256xi1>
      %243 = arith.select %242, %239, %240 : vector<16x256xi1>, vector<16x256xbf16>
      %c96_204 = arith.constant 96 : index
      %c0_205 = arith.constant 0 : index
      %244 = vector.load %arg9[%c96_204, %c0_205] : memref<144x256xbf16, #tpu.memory_space<vmem>>, vector<16x256xbf16>
      tpu.vector_store %arg9[%c96_204, %c0_205], %243 {strides = array<i32>} : memref<144x256xbf16, #tpu.memory_space<vmem>>, vector<16x256xbf16>,
      %c0_206 = arith.constant 0 : index
      %c144_207 = arith.constant 144 : index
      %245 = vector.load %arg8[%c0_206, %c144_207] : memref<16x512xbf16, #tpu.memory_space<vmem>>, vector<16x256xbf16>
      %c112_208 = arith.constant 112 : index
      %c0_209 = arith.constant 0 : index
      %246 = vector.load %arg9[%c112_208, %c0_209] : memref<144x256xbf16, #tpu.memory_space<vmem>>, vector<16x256xbf16>
      tpu.vector_store %arg9[%c112_208, %c0_209], %245 {strides = array<i32>} : memref<144x256xbf16, #tpu.memory_space<vmem>>, vector<16x256xbf16>,
      %c0_210 = arith.constant 0 : index
      %c145_211 = arith.constant 145 : index
      %247 = vector.load %arg8[%c0_210, %c145_211] : memref<16x512xbf16, #tpu.memory_space<vmem>>, vector<16x256xbf16>
      %cst_212 = arith.constant 0.000000e+00 : bf16
      %248 = vector.broadcast %cst_212 : bf16 to vector<16x256xbf16>
      %249 = vector.shape_cast %20 : vector<1x256xi1> to vector<1x256xi1>
      %250 = vector.broadcast %249 : vector<1x256xi1> to vector<16x256xi1>
      %251 = arith.select %250, %247, %248 : vector<16x256xi1>, vector<16x256xbf16>
      %c128_213 = arith.constant 128 : index
      %c0_214 = arith.constant 0 : index
      %252 = vector.load %arg9[%c128_213, %c0_214] : memref<144x256xbf16, #tpu.memory_space<vmem>>, vector<16x256xbf16>
      tpu.vector_store %arg9[%c128_213, %c0_214], %251 {strides = array<i32>} : memref<144x256xbf16, #tpu.memory_space<vmem>>, vector<16x256xbf16>,
      %c3 = arith.constant 3 : index
      %c0_215 = arith.constant 0 : index
      %c0_216 = arith.constant 0 : index
      %253 = vector.load %arg3[%c3, %c0_215, %c0_216] : memref<4x16x144xbf16, #tpu.memory_space<vmem>>, vector<1x16x144xbf16>
      %254 = vector.shape_cast %253 : vector<1x16x144xbf16> to vector<16x144xbf16>
      %c0_217 = arith.constant 0 : index
      %c0_218 = arith.constant 0 : index
      %255 = vector.load %arg9[%c0_217, %c0_218] : memref<144x256xbf16, #tpu.memory_space<vmem>>, vector<144x256xbf16>
      %cst_219 = arith.constant dense<0.000000e+00> : vector<16x256xf32>
      %256 = tpu.matmul %254, %255, %cst_219 {dimension_numbers = #tpu.dot_dimension_numbers<[1], [0], [0], [1], [0, 0, 1, 1], [], []>} : vector<16x144xbf16>, vector<144x256xbf16>, vector<16x256xf32> -> vector<16x256xf32>
      %cst_220 = arith.constant 0.000000e+00 : f32
      %257 = vector.broadcast %cst_220 : f32 to vector<16x256xf32>
      %258 = arith.cmpf ogt, %256, %257 : vector<16x256xf32>
      %cst_221 = arith.constant 2.000000e-01 : f32
      %259 = vector.broadcast %cst_221 : f32 to vector<16x256xf32>
      %260 = arith.mulf %259, %256 : vector<16x256xf32>
      %261 = arith.select %258, %256, %260 : vector<16x256xi1>, vector<16x256xf32>
      %262 = arith.truncf %261 : vector<16x256xf32> to vector<16x256xbf16>
      %c48_222 = arith.constant 48 : index
      %c0_223 = arith.constant 0 : index
      %263 = vector.load %arg7[%c48_222, %c0_223] : memref<64x256xbf16, #tpu.memory_space<vmem>>, vector<16x256xbf16>
      tpu.vector_store %arg7[%c48_222, %c0_223], %262 {strides = array<i32>} : memref<64x256xbf16, #tpu.memory_space<vmem>>, vector<16x256xbf16>,
      %c0_224 = arith.constant 0 : index
      %c0_225 = arith.constant 0 : index
      %264 = vector.load %arg4[%c0_224, %c0_225] : memref<64x64xbf16, #tpu.memory_space<vmem>>, vector<64x64xbf16>
      %c0_226 = arith.constant 0 : index
      %c0_227 = arith.constant 0 : index
      %265 = vector.load %arg7[%c0_226, %c0_227] : memref<64x256xbf16, #tpu.memory_space<vmem>>, vector<64x256xbf16>
      %cst_228 = arith.constant dense<0.000000e+00> : vector<64x256xf32>
      %266 = tpu.matmul %264, %265, %cst_228 {dimension_numbers = #tpu.dot_dimension_numbers<[1], [0], [0], [1], [0, 0, 1, 1], [], []>} : vector<64x64xbf16>, vector<64x256xbf16>, vector<64x256xf32> -> vector<64x256xf32>
      %cst_229 = arith.constant 0.000000e+00 : f32
      %267 = vector.broadcast %cst_229 : f32 to vector<64x256xf32>
      %268 = arith.cmpf ogt, %266, %267 : vector<64x256xf32>
      %cst_230 = arith.constant 2.000000e-01 : f32
      %269 = vector.broadcast %cst_230 : f32 to vector<64x256xf32>
      %270 = arith.mulf %269, %266 : vector<64x256xf32>
      %271 = arith.select %268, %266, %270 : vector<64x256xi1>, vector<64x256xf32>
      %272 = arith.index_cast %arg10 : i32 to index
      %c0_231 = arith.constant 0 : index
      %c0_232 = arith.constant 0 : index
      %273 = vector.load %arg5[%272, %c0_231, %c0_232] : memref<2x64x256xf32, #tpu.memory_space<vmem>>, vector<1x64x256xf32>
      %274 = vector.shape_cast %273 : vector<1x64x256xf32> to vector<64x256xf32>
      %275 = vector.shape_cast %271 : vector<64x256xf32> to vector<1x64x256xf32>
      tpu.vector_store %arg5[%272, %c0_231, %c0_232], %275 {strides = array<i32>} : memref<2x64x256xf32, #tpu.memory_space<vmem>>, vector<1x64x256xf32>,
    }
    %c2_i32_8 = arith.constant 2 : i32
    return
  }
  func.func @transform_0(%arg0: i32) -> (i32, i32, i32) {
    %c0_i32 = arith.constant 0 : i32
    %c0_i32_0 = arith.constant 0 : i32
    %c0_i32_1 = arith.constant 0 : i32
    return %arg0, %c0_i32, %c0_i32_0 : i32, i32, i32
  }
  func.func @transform_1(%arg0: i32) -> (i32, i32) {
    %c0_i32 = arith.constant 0 : i32
    %c0_i32_0 = arith.constant 0 : i32
    %c0_i32_1 = arith.constant 0 : i32
    return %c0_i32, %c0_i32_0 : i32, i32
  }
  func.func @transform_2(%arg0: i32) -> (i32, i32, i32) {
    %c0_i32 = arith.constant 0 : i32
    %c0_i32_0 = arith.constant 0 : i32
    %c0_i32_1 = arith.constant 0 : i32
    %c0_i32_2 = arith.constant 0 : i32
    return %c0_i32, %c0_i32_0, %c0_i32_1 : i32, i32, i32
  }
  func.func @transform_3(%arg0: i32) -> (i32, i32) {
    %c0_i32 = arith.constant 0 : i32
    %c0_i32_0 = arith.constant 0 : i32
    %c0_i32_1 = arith.constant 0 : i32
    return %c0_i32, %c0_i32_0 : i32, i32
  }
  func.func @transform_4(%arg0: i32) -> (i32, i32, i32) {
    %c0_i32 = arith.constant 0 : i32
    %c0_i32_0 = arith.constant 0 : i32
    %c0_i32_1 = arith.constant 0 : i32
    return %arg0, %c0_i32, %c0_i32_0 : i32, i32, i32
  }
}

</mosaic_0001>

<bundles_post_ra>
// kernel: res2block_pallas.1
= control target key start
LH: loop header
LB: loop body
LE: loop exit
PB: predicated region body
PF: predicated region fallthrough
CT: control target
= control target key end

     0   :  { %s2953_s15 = smov 0   ;;  %s3920_s0 = inlined_call_operand.vmem [shape: f32[4,64,256], index: 0, kind: input, shape index: {}]   ;;  %s3921_s1 = inlined_call_operand.vmem [shape: bf16[64,64], index: 1, kind: input, shape index: {}]   ;;  %s3922_s2 = inlined_call_operand.vmem [shape: bf16[4,16,144], index: 2, kind: input, shape index: {}]   ;;  %s3923_s3 = inlined_call_operand.vmem [shape: bf16[64,64], index: 3, kind: input, shape index: {}]   ;;  %s3924_s4 = inlined_call_operand.vmem [shape: f32[4,64,256], index: 4, kind: output, shape index: {}]  }
   0x1 LB: > { %s2666_s16 = sadd.s32 4294967295, %s2912_s15   ;;  %p2670_p0 = scmp.ge.s32.totalorder %s2912_s15, 1  ;;  %s2912_s15 = sphi %s2953_s15, %s14_s15  }
   0x2   : > { %p164_p1 = scmp.lt.s32.totalorder %s2912_s15, 3 }
   0x4   : > { %p165_p2 = pnand %p2670_p0, %p164_p1 }
   0x5   : > { %s2671_s17 = sshll.u32 (!%p165_p2), %s2666_s16, 1  ;;  %s2987_s25 = smov (!%p165_p2), 0  }
   0x6   : > { %168 = sbr.rel (%p165_p2) target bundleno = 2042 (0x7fa), region = 36  ;;  %p193_p3 = scmp.lt.s32.totalorder (!%p165_p2), %s2671_s17, 3 }
   0xb   : > { %v209_v0 = vlaneseq  ;;  %v2918_v1 = vmov 0   ;;  %s4114_s17 = smov (!%p193_p3, %s2671_s17), 3  ;;  %v3941_v6 = vmov 0  ;;  %v3943_v7 = vmov 0 }
   0xc   : > { %240 = vst [vmem:[#allocation4] sm:$0xf] %v2918_v1  ;;  %241 = vst [vmem:[#allocation4 + $0x10] sm:$0xf] %v2918_v1  ;;  %s2812_s18 = sshll.u32 %s4114_s17, 7 }
   0xd   : > { %242 = vst [vmem:[#allocation4 + $0xc] sm:$0xf] %v2918_v1  ;;  %243 = vst [vmem:[#allocation4 + $0x1c] sm:$0xf] %v2918_v1  ;;  %v210_v2 = vand.u32 127, %v209_v0  ;;  %s2964_s21 = scalar_lea.vmem %s3920_s0, %s2812_s18  ;;  %s2969_s24 = scalar_lea.vmem %s3924_s4, %s2812_s18 }
   0xf   : > { %v211_v3 = vadd.s32 128, %v210_v2  ;;  %v216_v4 = vand.u32 15, %v210_v2 }
  0x11   : > { %v223_v5 = vand.u32 15, %v211_v3  ;;  %vm2971_vm0 = vcmp.ge.s32.totalorder %v216_v4, 1  ;;  %vm2975_vm1 = vcmp.le.s32.totalorder %v216_v4, 14 }
  0x12   : > { %v3942_v6 = vsel %vm2971_vm0, 4294967295, %v3941_v6  ;;  %v3944_v7 = vsel %vm2975_vm1, 4294967295, %v3943_v7 }
  0x13   : > { %vm2979_vm2 = vcmp.ge.s32.totalorder %v223_v5, 1  ;;  %vm2983_vm3 = vcmp.le.s32.totalorder %v223_v5, 14 }
  0x14 LB: >> { %v2919_v10 = vmov 0   ;;  %vm3949_vm0 = vnez %v3942_v6  ;;  %s2814_s26 = sshll.u32 %s2916_s25, 7  ;;  %vm3950_vm1 = vnez %v3944_v7  ;;  %s2920_s28 = smov 15   ;;  %v716_v34 = vld [vmem:[#allocation4 + $0xc] sm:$0xf]  ;;  %v2874_v39 = vld [vmem:[%s3921_s1] sm:$0xff]   ;;  %s2916_s25 = sphi %s2987_s25, %s249_s25  }
  0x15   : >> { %350 = vmatprep.mubr.bf16.mxu0 %v2919_v10  ;;  %vm481_vm4 = vmpackc.low %vm2979_vm2, %vm3949_vm0  ;;  %s3006_s27 = scalar_lea.vmem %s2964_s21, %s2814_s26  ;;  %s2921_s29 = smov 127   ;;  %v718_v38 = vld [vmem:[#allocation4 + $0x1c] sm:$0xf]  ;;  %vm3929_vm6 = vcmask 523264   ;;  %v678_v42 = vld [vmem:[#allocation4 + $0xc] sm:$0xf] }
  0x16   : >> { %v482_v11 = vsel %vm481_vm4, 65537, %v2919_v10  ;;  %vm557_vm5 = vmpackc.low %vm2983_vm3, %vm3950_vm1  ;;  %v266_v12 = vld [vmem:[%s3006_s27 + $0x68] sm:$0xff]  ;;  %v268_v13 = vld [vmem:[%s3006_s27 + $0x78] sm:$0xff]  ;;  %s2922_s30 = smov 1   ;;  %s2923_s5 = smov 113   ;;  %vm3925_vm13 = vcmask 121856  }
  0x17   : >> { %681 = vrot.lane.b32.xlu0 %v482_v11, %s2920_s28  ;;  %599 = vrot.lane.b32.xlu1 %v482_v11, %s2921_s29  ;;  %v265_v14 = vld [vmem:[%s3006_s27 + $0x60] sm:$0xff]  ;;  %v276_v15 = vpack.c.bf16 %v268_v13, %v266_v12  ;;  %v267_v16 = vld [vmem:[%s3006_s27 + $0x70] sm:$0xff]  ;;  %v558_v19 = vsel %vm557_vm5, 65537, %v2919_v10  ;;  %s2924_s6 = smov 111   ;;  %s2925_s7 = smov 17   ;;  %vm3926_vm14 = vcmask 7168  }
  0x18   : >> { %v262_v17 = vld [vmem:[%s3006_s27 + $0x48] sm:$0xff]  ;;  %v264_v18 = vld [vmem:[%s3006_s27 + $0x58] sm:$0xff]  ;;  %v275_v20 = vpack.c.bf16 %v267_v16, %v265_v14  ;;  %v261_v22 = vld [vmem:[%s3006_s27 + $0x40] sm:$0xff]  ;;  %s2926_s8 = smov 112   ;;  %s2927_s11 = smov 16   ;;  %vm3927_vm5 = vcmask 1039360  }
  0x19   : >> { %v274_v21 = vpack.c.bf16 %v264_v18, %v262_v17  ;;  %v263_v23 = vld [vmem:[%s3006_s27 + $0x50] sm:$0xff]  ;;  %v258_v24 = vld [vmem:[%s3006_s27 + $0x28] sm:$0xff]  ;;  %326 = vmatprep.subr.bf16.mxu0 %v276_v15  ;;  %v260_v25 = vld [vmem:[%s3006_s27 + $0x38] sm:$0xff]  ;;  %s3896_s23 = scalar_lea.vmem %s2969_s24, %s2814_s26  ;;  %s249_s25 = sadd.s32 1, %s2916_s25  }
  0x1a   : >> { %327 = vmatpush1.bf16.msra.mxu0 %v275_v20  ;;  %v273_v26 = vpack.c.bf16 %v263_v23, %v261_v22  ;;  %v257_v27 = vld [vmem:[%s3006_s27 + $0x20] sm:$0xff]  ;;  %v259_v28 = vld [vmem:[%s3006_s27 + $0x30] sm:$0xff]  ;;  %v254_v29 = vld [vmem:[%s3006_s27 + $0x8] sm:$0xff]  ;;  %v272_v30 = vpack.c.bf16 %v260_v25, %v258_v24  ;;  %p246_p4 = scmp.ge.s32.totalorder %s249_s25, 2  }
  0x1b   : >> { %643 = vrot.lane.b32.xlu0 %v558_v19, %s2922_s30  ;;  %559 = vrot.lane.b32.xlu1 %v558_v19, %s2923_s5  ;;  %v256_v31 = vld [vmem:[%s3006_s27 + $0x18] sm:$0xff]  ;;  %v253_v32 = vld [vmem:[%s3006_s27] sm:$0xff]  ;;  %v271_v35 = vpack.c.bf16 %v259_v28, %v257_v27  ;;  %v640_v50 = vld [vmem:[#allocation4 + $0xc] sm:$0xf] }
  0x1c   : >> { %328 = vmatprep.subr.bf16.mxu0 %v274_v21  ;;  %v255_v33 = vld [vmem:[%s3006_s27 + $0x10] sm:$0xff]  ;;  %v270_v36 = vpack.c.bf16 %v256_v31, %v254_v29  ;;  %v680_v44 = vld [vmem:[#allocation4 + $0x1c] sm:$0xf] }
  0x1d   : >> { %v269_v37 = vpack.c.bf16 %v255_v33, %v253_v32  ;;  %v642_v52 = vld [vmem:[#allocation4 + $0x1c] sm:$0xf] }
  0x1e   : >> { %329 = vmatpush1.bf16.msra.mxu0 %v273_v26  ;;  %v2059_v43 = vld [vmem:[#allocation4 + $0x1c] sm:$0xf] }
  0x1f   : >> { %483 = vrot.lane.b32.xlu0 %v482_v11, %s2924_s6  ;;  %748 = vrot.lane.b32.xlu1 %v558_v19, %s2925_s7 }
  0x20   : >> { %330 = vmatprep.subr.bf16.mxu0 %v272_v30 }
  0x22   : >> { %331 = vmatpush1.bf16.msra.mxu0 %v271_v35 }
  0x23   : >> { %725 = vrot.lane.b32.xlu1 %v716_v34, %s2926_s8  ;;  %332 = vmatprep.subr.bf16.mxu0 %v270_v36 }
  0x26   : >> { %333 = vmatpush1.bf16.msra.mxu0 %v269_v37 }
  0x27   : >> { %729 = vrot.lane.b32.xlu1 %v718_v38, %s2926_s8 }
  0x29   : >> { %2683 = vmatmul.mubr.msk.bf16.vlgmr.msra.gmra.mxu0 %vm3929_vm6, %v2874_v39 }
  0x2a   : >> { %360 = vmatprep.mubr.bf16.mxu0 %v2919_v10 }
  0x89   : >> { %v682_v40 = vpop.permute.xlu0 %681  ;;  %v600_v1 = vpop.permute.xlu1 %599 }
  0x8a   : >> { %v683_v41 = vrot.slane %v682_v40, 4  ;;  %v601_v5 = vrot.slane %v600_v1, 4 }
  0x8c   : >> { %vm3038_vm7 = vcmp.ne.s16.totalorder %v683_v41, 0  ;;  %v3081_v12 = vsel %vm3925_vm13, %v683_v41, %v682_v40  ;;  %vm3088_vm4 = vcmp.ne.s16.totalorder %v601_v5, 0  ;;  %v3111_v25 = vsel %vm3927_vm5, %v601_v5, %v600_v1  ;;  %v1157_v1 = vld [vmem:[#allocation4 + $0xc] sm:$0xf] }
  0x8d   : >> { %v688_v45 = vsel %vm3038_vm7, %v678_v42, 0  ;;  %v644_v46 = vpop.permute.xlu0 %643  ;;  %v690_v48 = vsel %vm3038_vm7, %v680_v44, 0  ;;  %v560_v14 = vpop.permute.xlu1 %559  ;;  %vm3930_vm15 = vcmp.ne.s16.totalorder %v3081_v12, 0  ;;  %v745_v44 = vld [vmem:[#allocation4 + $0xc] sm:$0xf] }
  0x8e   : >> { %697 = vrot.lane.b32.xlu1 %v688_v45, %s2923_s5  ;;  %v645_v47 = vrot.slane %v644_v46, 4  ;;  %v561_v18 = vrot.slane %v560_v14, 4  ;;  %v2875_v5 = vld [vmem:[%s3921_s1 + $0x8] sm:$0xff]  }
  0x90   : >> { %vm3047_vm8 = vcmp.ne.s16.totalorder %v645_v47, 0  ;;  %v3096_v20 = vsel %vm3926_vm14, %v645_v47, %v644_v46 }
  0x91   : >> { %v650_v51 = vsel %vm3047_vm8, %v640_v50, 0  ;;  %v652_v53 = vsel %vm3047_vm8, %v642_v52, 0  ;;  %v484_v26 = vpop.permute.xlu0 %483  ;;  %v749_v38 = vpop.permute.xlu1 %748  ;;  %v747_v52 = vld [vmem:[#allocation4 + $0x1c] sm:$0xf] }
  0x92   : >> { %701 = vrot.lane.b32.xlu1 %v690_v48, %s2923_s5  ;;  %v485_v29 = vrot.slane %v484_v26, 4  ;;  %v750_v40 = vrot.slane %v749_v38, 4 }
  0x94   : >> { %vm3128_vm14 = vcmp.ne.s16.totalorder %v485_v29, 0  ;;  %vm3146_vm5 = vcmp.ne.s16.totalorder %v750_v40, 0 }
  0x95   : >> { %v755_v47 = vsel %vm3146_vm5, %v745_v44, 0 }
  0x96   : >> { %659 = vrot.lane.b32.xlu1 %v650_v51, %s2921_s29 }
  0x9a   : >> { %663 = vrot.lane.b32.xlu1 %v652_v53, %s2921_s29 }
  0xe9   : >> { %v352_v54 = vpop.f32.mrf.mxu0 }
  0xea   : >> { %v407_v55 = vmul.f32 0.2, %v352_v54  ;;  %vm391_vm9 = vcmp.gt.f32.partialorder %v352_v54, 0.0 }
  0xeb   : >> { %v354_v56 = vpop.f32.mrf.mxu0 }
  0xec   : >> { %vm392_vm10 = vcmp.gt.f32.partialorder %v354_v56, 0.0  ;;  %v408_v57 = vmul.f32 0.2, %v354_v56  ;;  %v3058_v59 = vsel %vm391_vm9, %v352_v54, %v407_v55  ;;  %vm3931_vm9 = vcmp.ne.s16.totalorder %v3096_v20, 0 }
  0xed   : >> { %v356_v58 = vpop.f32.mrf.mxu0  ;;  %v757_v55 = vsel %vm3146_vm5, %v747_v52, 0 }
  0xee   : >> { %v3060_v60 = vsel %vm392_vm10, %v354_v56, %v408_v57  ;;  %v409_v61 = vmul.f32 0.2, %v356_v58  ;;  %vm393_vm11 = vcmp.gt.f32.partialorder %v356_v58, 0.0  ;;  %vm3104_vm10 = vcmp.ne.s16.totalorder %v561_v18, 0  ;;  %v1189_v57 = vld [vmem:[#allocation4 + $0xc] sm:$0xf] }
  0xef   : >> { %v3064_v62 = vpack.c.bf16 %v3060_v60, %v3058_v59  ;;  %v358_v63 = vpop.f32.mrf.mxu0 }
  0xf0   : >> { %vm394_vm12 = vcmp.gt.f32.partialorder %v358_v63, 0.0  ;;  %v410_v0 = vmul.f32 0.2, %v358_v63  ;;  %v3069_v2 = vsel %vm393_vm11, %v356_v58, %v409_v61  ;;  %vm3928_vm11 = vcmask 924672  }
  0xf1   : >> { %471 = vst [vmem:[#allocation4 + $0x4] sm:$0xff] %v3064_v62  ;;  %723 = vrot.lane.b32.xlu0 %v3064_v62, %s2926_s8  ;;  %v2895_v13 = vpack.c.bf16 %v3069_v2, %v3058_v59  ;;  %v687_v22 = vsel %vm3930_vm15, %v3064_v62, 0  ;;  %v649_v28 = vsel %vm3931_vm9, %v3064_v62, 0  ;;  %v3122_v30 = vsel %vm3928_vm11, %v561_v18, %v560_v14  ;;  %v2878_v18 = vld [vmem:[%s3922_s2 + $0x4] ss:$8 sps:$4 sm:$0xff]  }
  0xf2   : >> { %v3071_v3 = vsel %vm394_vm12, %v358_v63, %v410_v0  ;;  %vm3932_vm12 = vcmp.ne.s16.totalorder %v3111_v25, 0  ;;  %vm3936_vm13 = vcmp.ne.s16.totalorder %v3122_v30, 0  ;;  %vm3937_vm11 = vcmask 908288   ;;  %v1191_v63 = vld [vmem:[#allocation4 + $0x1c] sm:$0xf] }
  0xf3   : >> { %v3075_v4 = vpack.c.bf16 %v3071_v3, %v3069_v2  ;;  %v2894_v11 = vpack.c.bf16 %v3071_v3, %v3060_v60  ;;  %v3162_v51 = vsel %vm3937_vm11, %v485_v29, %v484_v26  ;;  %v1161_v14 = vsel %vm3038_vm7, %v1157_v1, 0  ;;  %v1127_v26 = vld [vmem:[#allocation4 + $0x1c] sm:$0xf] }
  0xf4   : >> { %vm3934_vm6 = vcmp.ne.s16.totalorder %v3162_v51, 0  ;;  %vm3966_vm11 = vcmask 1039360  }
  0xf5   : >> { %472 = vst [vmem:[#allocation4 + $0x14] sm:$0xff] %v3075_v4  ;;  %v689_v48 = vsel %vm3930_vm15, %v3075_v4, 0  ;;  %v651_v54 = vsel %vm3931_vm9, %v3075_v4, 0  ;;  %vm3938_vm15 = vcmask 138240  }
  0xf6   : >> { %v3184_v61 = vsel %vm3938_vm15, %v750_v40, %v749_v38  ;;  %vm3967_vm15 = vmmov %vm3966_vm11 }
  0xf7   : >> { %vm3933_vm9 = vcmp.ne.s16.totalorder %v3184_v61, 0 }
  0xf8   : >> { %v521_v15 = vld [vmem:[#allocation4 + $0x8] sm:$0xf]  ;;  %v3085_v16 = vld [vmem:[#allocation4] sm:$0xff] }
  0xf9   : >> { %530 = vrot.lane.b32.xlu1 %v521_v15, %s2927_s11  ;;  %v596_v19 = vld [vmem:[#allocation4 + $0x8] sm:$0xf]  ;;  %528 = vrot.lane.b32.xlu0 %v3085_v16, %s2927_s11  ;;  %v606_v32 = vsel %vm3932_vm12, %v3085_v16, 0  ;;  %v566_v36 = vsel %vm3936_vm13, %v3085_v16, 0  ;;  %v490_v56 = vsel %vm3934_vm6, %v3085_v16, 0  ;;  %v754_v15 = vsel %vm3933_vm9, %v3064_v62, 0 }
  0xfa   : >> { %v607_v21 = vsel %vm3088_vm4, %v596_v19, 0  ;;  %v550_v24 = vld [vmem:[#allocation4 + $0x8] sm:$0xf]  ;;  %v1159_v16 = vld [vmem:[#allocation4 + $0x1c] sm:$0xf] }
  0xfb   : >> { %v567_v27 = vsel %vm3104_vm10, %v550_v24, 0  ;;  %v474_v34 = vld [vmem:[#allocation4 + $0x8] sm:$0xf]  ;;  %v1163_v19 = vsel %vm3038_vm7, %v1159_v16, 0  ;;  %v1125_v62 = vld [vmem:[#allocation4 + $0xc] sm:$0xf] }
  0xfc   : >> { %v523_v31 = vld [vmem:[#allocation4 + $0x18] sm:$0xf]  ;;  %v491_v35 = vsel %vm3128_vm14, %v474_v34, 0  ;;  %v522_v46 = vld [vmem:[#allocation4 + $0x10] sm:$0xff]  ;;  %v756_v24 = vsel %vm3933_vm9, %v3075_v4, 0  ;;  %vm3939_vm9 = vcmask 1043456  }
  0xfd   : >> { %616 = vrot.lane.b32.xlu1 %v607_v21, %s2922_s30  ;;  %695 = vrot.lane.b32.xlu0 %v687_v22, %s2923_s5  ;;  %v598_v37 = vld [vmem:[#allocation4 + $0x18] sm:$0xf]  ;;  %v608_v58 = vsel %vm3932_vm12, %v522_v46, 0  ;;  %v568_v0 = vsel %vm3936_vm13, %v522_v46, 0  ;;  %vm3963_vm12 = vcmask 523264   ;;  %v492_v21 = vsel %vm3934_vm6, %v522_v46, 0 }
  0xfe   : >> { %v609_v39 = vsel %vm3088_vm4, %v598_v37, 0  ;;  %v552_v41 = vld [vmem:[#allocation4 + $0x18] sm:$0xf]  ;;  %2684 = vmatmul.mubr.msk.bf16.gmra.mxu0 %vm3963_vm12, %v2875_v5  ;;  %vm3940_vm12 = vcmask 130048   ;;  %v1129_v22 = vsel %vm3047_vm8, %v1125_v62, 0  ;;  %vm3935_vm6 = vcmask 916480  }
  0xff   : >> { %v569_v45 = vsel %vm3104_vm10, %v552_v41, 0  ;;  %v476_v50 = vld [vmem:[#allocation4 + $0x18] sm:$0xf]  ;;  %370 = vmatprep.mubr.bf16.mxu0 %v2919_v10  ;;  %2709 = vmatprep.mubr.msk.bf16.mxu1 %vm3940_vm12, %v2878_v18 }
 0x100   : >> { %v493_v53 = vsel %vm3128_vm14, %v476_v50, 0 }
 0x101   : >> { %576 = vrot.lane.b32.xlu1 %v567_v27, %s2920_s28  ;;  %657 = vrot.lane.b32.xlu0 %v649_v28, %s2921_s29  ;;  %v1131_v27 = vsel %vm3047_vm8, %v1127_v26, 0  ;;  %v726_v28 = vpop.permute.xlu1 %725 }
 0x105   : >> { %534 = vrot.lane.b32.xlu1 %v523_v31, %s2927_s11  ;;  %614 = vrot.lane.b32.xlu0 %v606_v32, %s2922_s30  ;;  %v730_v29 = vpop.permute.xlu1 %729 }
 0x106   : >> { %v734_v52 = vrot.slane %v730_v29, 4 }
 0x109   : >> { %500 = vrot.lane.b32.xlu1 %v491_v35, %s2925_s7  ;;  %574 = vrot.lane.b32.xlu0 %v566_v36, %s2920_s28  ;;  %v698_v31 = vpop.permute.xlu1 %697 }
 0x10d   : >> { %620 = vrot.lane.b32.xlu1 %v609_v39, %s2922_s30  ;;  %727 = vrot.lane.b32.xlu0 %v3075_v4, %s2926_s8  ;;  %v702_v32 = vpop.permute.xlu1 %701 }
 0x111   : >> { %580 = vrot.lane.b32.xlu1 %v569_v45, %s2920_s28  ;;  %532 = vrot.lane.b32.xlu0 %v522_v46, %s2927_s11  ;;  %v660_v34 = vpop.permute.xlu1 %659  ;;  %v732_v46 = vrot.slane %v726_v28, 4 }
 0x112   : >> { %v666_v18 = vrot.slane %v660_v34, 4 }
 0x115   : >> { %764 = vrot.lane.b32.xlu1 %v755_v47, %s2924_s6  ;;  %699 = vrot.lane.b32.xlu0 %v689_v48, %s2923_s5  ;;  %v664_v35 = vpop.permute.xlu1 %663 }
 0x116   : >> { %v668_v26 = vrot.slane %v664_v35, 4 }
 0x119   : >> { %504 = vrot.lane.b32.xlu1 %v493_v53, %s2925_s7  ;;  %661 = vrot.lane.b32.xlu0 %v651_v54, %s2921_s29 }
 0x11d   : >> { %768 = vrot.lane.b32.xlu1 %v757_v55, %s2924_s6  ;;  %498 = vrot.lane.b32.xlu0 %v490_v56, %s2925_s7 }
 0x121   : >> { %1198 = vrot.lane.b32.xlu1 %v1189_v57, %s2926_s8  ;;  %618 = vrot.lane.b32.xlu0 %v608_v58, %s2922_s30 }
 0x125   : >> { %1202 = vrot.lane.b32.xlu1 %v1191_v63, %s2926_s8  ;;  %578 = vrot.lane.b32.xlu0 %v568_v0, %s2920_s28  ;;  %v704_v63 = vrot.slane %v698_v31, 4 }
 0x129   : >> { %1170 = vrot.lane.b32.xlu1 %v1161_v14, %s2923_s5  ;;  %762 = vrot.lane.b32.xlu0 %v754_v15, %s2924_s6  ;;  %v706_v15 = vrot.slane %v702_v32, 4 }
 0x12d   : >> { %1174 = vrot.lane.b32.xlu1 %v1163_v19, %s2923_s5  ;;  %502 = vrot.lane.b32.xlu0 %v492_v21, %s2925_s7 }
 0x131   : >> { %1138 = vrot.lane.b32.xlu1 %v1129_v22, %s2921_s29  ;;  %766 = vrot.lane.b32.xlu0 %v756_v24, %s2924_s6 }
 0x135   : >> { %1142 = vrot.lane.b32.xlu1 %v1131_v27, %s2921_s29 }
 0x163   : >> { %v724_v36 = vpop.permute.xlu0 %723 }
 0x164   : >> { %v731_v47 = vrot.slane %v724_v36, 4 }
 0x166   : >> { %v735_v54 = vsel %vm3939_vm9, %v731_v47, %v732_v46 }
 0x167   : >> { %v737_v57 = vsel %vm3935_vm6, %v724_v36, %v735_v54 }
 0x16b   : >> { %v3223_v37 = vpop.permute.xlu0 %528  ;;  %v3225_v4 = vpop.permute.xlu1 %530 }
 0x16f   : >> { %v696_v38 = vpop.permute.xlu0 %695  ;;  %v617_v39 = vpop.permute.xlu1 %616 }
 0x170   : >> { %v703_v0 = vrot.slane %v696_v38, 4 }
 0x172   : >> { %v707_v19 = vsel %vm3939_vm9, %v703_v0, %v704_v63 }
 0x173   : >> { %v658_v40 = vpop.permute.xlu0 %657  ;;  %v3229_v44 = vpop.permute.xlu1 %576 }
 0x174   : >> { %v665_v21 = vrot.slane %v658_v40, 4 }
 0x176   : >> { %v669_v31 = vsel %vm3939_vm9, %v665_v21, %v666_v18 }
 0x177   : >> { %v3227_v41 = vpop.permute.xlu0 %614  ;;  %v3233_v48 = vpop.permute.xlu1 %534  ;;  %v670_v47 = vsel %vm3966_vm11, %v658_v40, %v669_v31 }
 0x178   : >> { %v622_v35 = vrot.slane %v3227_v41, 4 }
 0x17b   : >> { %v3231_v45 = vpop.permute.xlu0 %574  ;;  %v3241_v1 = vpop.permute.xlu1 %500 }
 0x17f   : >> { %v728_v50 = vpop.permute.xlu0 %727  ;;  %v621_v22 = vpop.permute.xlu1 %620 }
 0x180   : >> { %v733_v53 = vrot.slane %v728_v50, 4  ;;  %v625_v0 = vrot.slane %v621_v22, 4 }
 0x182   : >> { %v738_v55 = vsel %vm3939_vm9, %v733_v53, %v734_v52 }
 0x183   : >> { %v3237_v56 = vpop.permute.xlu0 %532  ;;  %v739_v58 = vsel %vm3935_vm6, %v728_v50, %v738_v55  ;;  %vm3964_vm6 = vcmask 924672   ;;  %v623_v55 = vrot.slane %v617_v39, 4  ;;  %v536_v39 = vrot.slane %v3223_v37, 4 }
 0x184   : >> { %v2706_v5 = vcombine.high %v737_v57, %v739_v58  ;;  %v2705_v14 = vcombine.low %v737_v57, %v739_v58  ;;  %v708_v27 = vsel %vm3964_vm6, %v696_v38, %v707_v19  ;;  %vm3965_vm13 = vmmov %vm3964_vm6  ;;  %v581_v38 = vpop.permute.xlu1 %580  ;;  %v582_v57 = vrot.slane %v3231_v45, 4 }
 0x185   : >> { %v626_v63 = vsel %vm3939_vm9, %v622_v35, %v623_v55  ;;  %v538_v40 = vrot.slane %v3237_v56, 4  ;;  %vm3968_vm6 = vcmask 7168   ;;  %v585_v22 = vrot.slane %v581_v38, 4 }
 0x186   : >> { %905 = vmatprep.subr.bf16.mxu1 %v2706_v5  ;;  %v628_v21 = vsel %vm3968_vm6, %v3227_v41, %v626_v63 }
 0x187   : >> { %906 = vmatpush1.bf16.msra.mxu1 %v2705_v14  ;;  %v700_v16 = vpop.permute.xlu0 %699  ;;  %v583_v14 = vrot.slane %v3229_v44, 4 }
 0x188   : >> { %v705_v62 = vrot.slane %v700_v16, 4  ;;  %v765_v18 = vpop.permute.xlu1 %764 }
 0x18a   : >> { %v709_v24 = vsel %vm3939_vm9, %v705_v62, %v706_v15  ;;  %v537_v15 = vrot.slane %v3225_v4, 4  ;;  %v586_v62 = vsel %vm3939_vm9, %v582_v57, %v583_v14 }
 0x18b   : >> { %v710_v28 = vsel %vm3965_vm13, %v700_v16, %v709_v24  ;;  %v662_v29 = vpop.permute.xlu0 %661  ;;  %v539_v16 = vrot.slane %v3233_v48, 4  ;;  %vm3969_vm13 = vmmov %vm3968_vm6  ;;  %vm3972_vm6 = vcmask 138240  }
 0x18c   : >> { %v667_v36 = vrot.slane %v662_v29, 4  ;;  %v2704_v32 = vcombine.high %v708_v27, %v710_v28  ;;  %v2703_v46 = vcombine.low %v708_v27, %v710_v28  ;;  %v540_v24 = vsel %vm3939_vm9, %v536_v39, %v537_v15 }
 0x18e   : >> { %v671_v34 = vsel %vm3939_vm9, %v667_v36, %v668_v26  ;;  %907 = vmatprep.subr.bf16.mxu1 %v2704_v32  ;;  %v542_v36 = vsel %vm3940_vm12, %v3223_v37, %v540_v24  ;;  %v507_v32 = vrot.slane %v3241_v1, 4 }
 0x18f   : >> { %v672_v50 = vsel %vm3967_vm15, %v662_v29, %v671_v34  ;;  %908 = vmatpush1.bf16.msra.mxu1 %v2703_v46  ;;  %v499_v52 = vpop.permute.xlu0 %498  ;;  %vm3970_vm15 = vcmask 121856   ;;  %v771_v34 = vrot.slane %v765_v18, 4 }
 0x190   : >> { %v2702_v53 = vcombine.high %v670_v47, %v672_v50  ;;  %v2701_v54 = vcombine.low %v670_v47, %v672_v50  ;;  %v588_v41 = vsel %vm3970_vm15, %v3231_v45, %v586_v62  ;;  %vm3971_vm11 = vmmov %vm3970_vm15  ;;  %v506_v28 = vrot.slane %v499_v52, 4 }
 0x191   : >> { %vm3974_vm15 = vcmask 908288  }
 0x192   : >> { %909 = vmatprep.subr.bf16.mxu1 %v2702_v53 }
 0x193   : >> { %910 = vmatpush1.bf16.msra.mxu1 %v2701_v54  ;;  %v619_v58 = vpop.permute.xlu0 %618 }
 0x194   : >> { %v624_v5 = vrot.slane %v619_v58, 4  ;;  %911 = vmatprep.subr.bf16.mxu1 %v2894_v11  ;;  %v543_v11 = vsel %vm3939_vm9, %v538_v40, %v539_v16 }
 0x195   : >> { %v544_v27 = vsel %vm3940_vm12, %v3237_v56, %v543_v11  ;;  %v511_v56 = vsel %vm3939_vm9, %v506_v28, %v507_v32 }
 0x196   : >> { %v629_v19 = vsel %vm3939_vm9, %v624_v5, %v625_v0  ;;  %v2694_v46 = vcombine.high %v542_v36, %v544_v27  ;;  %v2693_v38 = vcombine.low %v542_v36, %v544_v27  ;;  %v513_v37 = vsel %vm3972_vm6, %v499_v52, %v511_v56  ;;  %v2876_v52 = vld [vmem:[%s3922_s2] ss:$8 sps:$4 sm:$0xff]  }
 0x197   : >> { %v630_v60 = vsel %vm3969_vm13, %v619_v58, %v629_v19  ;;  %912 = vmatpush1.bf16.msra.mxu1 %v2895_v13  ;;  %v579_v3 = vpop.permute.xlu0 %578  ;;  %v505_v13 = vpop.permute.xlu1 %504  ;;  %vm3973_vm13 = vmmov %vm3972_vm6 }
 0x198   : >> { %v584_v4 = vrot.slane %v579_v3, 4  ;;  %v2698_v44 = vcombine.high %v628_v21, %v630_v60  ;;  %v2697_v48 = vcombine.low %v628_v21, %v630_v60  ;;  %v509_v47 = vrot.slane %v505_v13, 4 }
 0x19a   : >> { %v589_v26 = vsel %vm3939_vm9, %v584_v4, %v585_v22  ;;  %913 = vmatprep.subr.bf16.mxu1 %v2698_v44 }
 0x19b   : >> { %v590_v59 = vsel %vm3971_vm11, %v579_v3, %v589_v26  ;;  %914 = vmatpush1.bf16.msra.mxu1 %v2697_v48  ;;  %v763_v2 = vpop.permute.xlu0 %762  ;;  %v769_v53 = vpop.permute.xlu1 %768  ;;  %vm3975_vm11 = vmmov %vm3974_vm15 }
 0x19c   : >> { %v2696_v29 = vcombine.high %v588_v41, %v590_v59  ;;  %v2695_v31 = vcombine.low %v588_v41, %v590_v59  ;;  %v770_v50 = vrot.slane %v763_v2, 4  ;;  %v773_v55 = vrot.slane %v769_v53, 4 }
 0x19e   : >> { %915 = vmatprep.subr.bf16.mxu1 %v2696_v29  ;;  %v774_v58 = vsel %vm3939_vm9, %v770_v50, %v771_v34 }
 0x19f   : >> { %916 = vmatpush1.bf16.msra.mxu1 %v2695_v31  ;;  %v503_v45 = vpop.permute.xlu0 %502  ;;  %v775_v14 = vsel %vm3974_vm15, %v763_v2, %v774_v58 }
 0x1a0   : >> { %v508_v35 = vrot.slane %v503_v45, 4  ;;  %917 = vmatprep.subr.bf16.mxu1 %v2694_v46 }
 0x1a2   : >> { %v514_v54 = vsel %vm3939_vm9, %v508_v35, %v509_v47 }
 0x1a3   : >> { %v515_v1 = vsel %vm3973_vm13, %v503_v45, %v514_v54  ;;  %918 = vmatpush1.bf16.msra.mxu1 %v2693_v38  ;;  %v767_v57 = vpop.permute.xlu0 %766 }
 0x1a4   : >> { %v772_v63 = vrot.slane %v767_v57, 4  ;;  %v2692_v0 = vcombine.high %v513_v37, %v515_v1  ;;  %v2691_v40 = vcombine.low %v513_v37, %v515_v1 }
 0x1a6   : >> { %v776_v5 = vsel %vm3939_vm9, %v772_v63, %v773_v55  ;;  %919 = vmatprep.subr.bf16.mxu1 %v2692_v0 }
 0x1a7   : >> { %v777_v15 = vsel %vm3975_vm11, %v767_v57, %v776_v5  ;;  %920 = vmatpush1.bf16.msra.mxu1 %v2691_v40 }
 0x1a8   : >> { %v2707_v39 = vcombine.low %v775_v14, %v777_v15  ;;  %v2708_v16 = vcombine.high %v775_v14, %v777_v15 }
 0x1aa   : >> { %935 = vmatprep.subr.bf16.mxu1 %v2708_v16 }
 0x1ab   : >> { %936 = vmatpush2.bf16.msra.mxu1 %v2707_v39 }
 0x1ae   : >> { %938 = vmatmul.mubr.bf16.vlgmr.msra.gmra.mxu1 %v2876_v52 }
 0x1be   : >> { %v362_v18 = vpop.f32.mrf.mxu0 }
 0x1bf   : >> { %v411_v62 = vmul.f32 0.2, %v362_v18  ;;  %vm395_vm6 = vcmp.gt.f32.partialorder %v362_v18, 0.0 }
 0x1c0   : >> { %v364_v19 = vpop.f32.mrf.mxu0 }
 0x1c1   : >> { %v412_v22 = vmul.f32 0.2, %v364_v19  ;;  %vm396_vm13 = vcmp.gt.f32.partialorder %v364_v19, 0.0  ;;  %v427_v24 = vsel %vm395_vm6, %v362_v18, %v411_v62 }
 0x1c2   : >> { %v366_v21 = vpop.f32.mrf.mxu0 }
 0x1c3   : >> { %v428_v26 = vsel %vm396_vm13, %v364_v19, %v412_v22  ;;  %v413_v41 = vmul.f32 0.2, %v366_v21  ;;  %vm397_vm12 = vcmp.gt.f32.partialorder %v366_v21, 0.0  ;;  %vm3981_vm13 = vcmask 523264  }
 0x1c4   : >> { %v368_v11 = vpop.f32.mrf.mxu0 }
 0x1c5   : >> { %v414_v59 = vmul.f32 0.2, %v368_v11  ;;  %vm398_vm0 = vcmp.gt.f32.partialorder %v368_v11, 0.0  ;;  %v429_v45 = vsel %vm397_vm12, %v366_v21, %v413_v41  ;;  %vm3979_vm12 = vcmp.ne.s16.totalorder %v3122_v30, 0 }
 0x1c7   : >> { %v430_v47 = vsel %vm398_vm0, %v368_v11, %v414_v59  ;;  %vm3976_vm0 = vcmp.ne.s16.totalorder %v3081_v12, 0  ;;  %v2880_v59 = vld [vmem:[%s3921_s1 + $0x18] sm:$0xff]  }
 0x1c8   : >> { %vm3980_vm6 = vmmov %vm3976_vm0 }
 0x26e   : >> { %v939_v60 = vpop.f32.mrf.mxu1 }
 0x26f   : >> { %vm948_vm15 = vcmp.gt.f32.partialorder %v939_v60, 0.0  ;;  %v952_v3 = vmul.f32 0.2, %v939_v60 }
 0x270   : >> { %v941_v4 = vpop.f32.mrf.mxu1 }
 0x271   : >> { %v956_v44 = vsel %vm948_vm15, %v939_v60, %v952_v3  ;;  %vm949_vm11 = vcmp.gt.f32.partialorder %v941_v4, 0.0  ;;  %v953_v48 = vmul.f32 0.2, %v941_v4  ;;  %v1217_v60 = vld [vmem:[#allocation4 + $0xc] sm:$0xf] }
 0x272   : >> { %v943_v27 = vpop.f32.mrf.mxu1  ;;  %v3292_v28 = vadd.f32 %v956_v44, %v427_v24  ;;  %v1221_v3 = vsel %vm3146_vm5, %v1217_v60, 0 }
 0x273   : >> { %v957_v2 = vsel %vm949_vm11, %v941_v4, %v953_v48  ;;  %vm950_vm9 = vcmp.gt.f32.partialorder %v943_v27, 0.0  ;;  %v954_v13 = vmul.f32 0.2, %v943_v27  ;;  %vm3983_vm11 = vcmp.ne.s16.totalorder %v3162_v51, 0 }
 0x274   : >> { %v3294_v29 = vadd.f32 %v957_v2, %v428_v26  ;;  %v945_v31 = vpop.f32.mrf.mxu1  ;;  %v1219_v26 = vld [vmem:[#allocation4 + $0x1c] sm:$0xf] }
 0x275   : >> { %v958_v36 = vsel %vm950_vm9, %v943_v27, %v954_v13  ;;  %vm951_vm1 = vcmp.gt.f32.partialorder %v945_v31, 0.0  ;;  %v955_v32 = vmul.f32 0.2, %v945_v31  ;;  %vm3978_vm9 = vcmp.ne.s16.totalorder %v3111_v25, 0 }
 0x276   : >> { %v3298_v46 = vpack.c.bf16 %v3294_v29, %v3292_v28  ;;  %v3300_v34 = vpack.c.bf16 %v958_v36, %v956_v44  ;;  %v3303_v50 = vadd.f32 %v958_v36, %v429_v45  ;;  %v2879_v44 = vld [vmem:[%s3921_s1 + $0x10] sm:$0xff]   ;;  %v1223_v41 = vsel %vm3146_vm5, %v1219_v26, 0 }
 0x277   : >> { %v959_v56 = vsel %vm951_vm1, %v945_v31, %v955_v32  ;;  %vm3977_vm1 = vcmp.ne.s16.totalorder %v3096_v20, 0  ;;  %2685 = vmatmul.mubr.msk.bf16.gmra.mxu0 %vm3981_vm13, %v2879_v44  ;;  %v1657_v31 = vld [vmem:[#allocation4 + $0x1c] sm:$0xf]  ;;  %v1623_v32 = vld [vmem:[#allocation4 + $0xc] sm:$0xf] }
 0x278   : >> { %994 = vst [vmem:[#allocation4 + $0x4] sm:$0xff] %v3298_v46  ;;  %v3305_v35 = vadd.f32 %v959_v56, %v430_v47  ;;  %1196 = vrot.lane.b32.xlu0 %v3298_v46, %s2926_s8  ;;  %v3309_v38 = vpack.c.bf16 %v959_v56, %v957_v2  ;;  %v2897_v55 = vpack.c.bf16 %v3303_v50, %v3292_v28  ;;  %v1160_v63 = vsel %vm3976_vm0, %v3298_v46, 0  ;;  %vm3982_vm15 = vmmov %vm3977_vm1  ;;  %v1655_v2 = vld [vmem:[#allocation4 + $0xc] sm:$0xf]  ;;  %v1625_v56 = vld [vmem:[#allocation4 + $0x1c] sm:$0xf] }
 0x279   : >> { %v1128_v5 = vsel %vm3977_vm1, %v3298_v46, 0  ;;  %380 = vmatprep.mubr.bf16.mxu0 %v2919_v10  ;;  %vm3984_vm0 = vmmov %vm3981_vm13  ;;  %v1627_v45 = vsel %vm3038_vm7, %v1623_v32, 0  ;;  %vm3989_vm13 = vcmask 130048  }
 0x27a   : >> { %v3313_v53 = vpack.c.bf16 %v3305_v35, %v3303_v50  ;;  %v2896_v54 = vpack.c.bf16 %v3305_v35, %v3294_v29  ;;  %vm3985_vm1 = vmmov %vm3978_vm9 }
 0x27c   : >> { %995 = vst [vmem:[#allocation4 + $0x14] sm:$0xff] %v3313_v53  ;;  %v1162_v11 = vsel %vm3980_vm6, %v3313_v53, 0  ;;  %v1130_v24 = vsel %vm3982_vm15, %v3313_v53, 0  ;;  %vm3988_vm6 = vmmov %vm3983_vm11 }
 0x27f   : >> { %v1029_v37 = vld [vmem:[#allocation4 + $0x8] sm:$0xf]  ;;  %v1028_v1 = vld [vmem:[#allocation4] sm:$0xff]  ;;  %2686 = vmatmul.mubr.msk.bf16.gmra.mxu0 %vm3984_vm0, %v2880_v59 }
 0x280   : >> { %1038 = vrot.lane.b32.xlu1 %v1029_v37, %s2927_s11  ;;  %v1089_v57 = vld [vmem:[#allocation4 + $0x8] sm:$0xf]  ;;  %1036 = vrot.lane.b32.xlu0 %v1028_v1, %s2927_s11  ;;  %v1092_v15 = vsel %vm3978_vm9, %v1028_v1, 0  ;;  %v1060_v52 = vsel %vm3979_vm12, %v1028_v1, 0  ;;  %v1000_v27 = vsel %vm3983_vm11, %v1028_v1, 0  ;;  %vm3986_vm9 = vmmov %vm3979_vm12  ;;  %vm3987_vm12 = vcmp.ne.s16.totalorder %v3184_v61, 0 }
 0x281   : >> { %v1093_v58 = vsel %vm3088_vm4, %v1089_v57, 0  ;;  %v1057_v0 = vld [vmem:[#allocation4 + $0x8] sm:$0xf]  ;;  %v1220_v47 = vsel %vm3987_vm12, %v3298_v46, 0  ;;  %v2883_v37 = vld [vmem:[%s3922_s2 + $0x14] ss:$8 sps:$4 sm:$0xff]   ;;  %vm3990_vm15 = vmmov %vm3987_vm12 }
 0x282   : >> { %v1061_v40 = vsel %vm3104_vm10, %v1057_v0, 0  ;;  %v997_v39 = vld [vmem:[#allocation4 + $0x8] sm:$0xf]  ;;  %v1629_v1 = vsel %vm3038_vm7, %v1625_v56, 0  ;;  %2736 = vmatprep.mubr.msk.bf16.mxu0 %vm3989_vm13, %v2883_v37  ;;  %v1593_v0 = vld [vmem:[#allocation4 + $0x1c] sm:$0xf] }
 0x283   : >> { %v1031_v14 = vld [vmem:[#allocation4 + $0x18] sm:$0xf]  ;;  %v1001_v16 = vsel %vm3128_vm14, %v997_v39, 0  ;;  %v1030_v22 = vld [vmem:[#allocation4 + $0x10] sm:$0xff]  ;;  %vm3991_vm11 = vcmask 1043456   ;;  %vm3997_vm13 = vcmask 924672  }
 0x284   : >> { %1102 = vrot.lane.b32.xlu1 %v1093_v58, %s2922_s30  ;;  %1168 = vrot.lane.b32.xlu0 %v1160_v63, %s2923_s5  ;;  %v1091_v18 = vld [vmem:[#allocation4 + $0x18] sm:$0xf]  ;;  %v1094_v13 = vsel %vm3985_vm1, %v1030_v22, 0  ;;  %v1062_v36 = vsel %vm3986_vm9, %v1030_v22, 0  ;;  %v1002_v57 = vsel %vm3988_vm6, %v1030_v22, 0  ;;  %v1222_v63 = vsel %vm3990_vm15, %v3313_v53, 0  ;;  %vm3992_vm0 = vmmov %vm3991_vm11 }
 0x285   : >> { %v1095_v19 = vsel %vm3088_vm4, %v1091_v18, 0  ;;  %v1059_v21 = vld [vmem:[#allocation4 + $0x18] sm:$0xf]  ;;  %v1591_v58 = vld [vmem:[#allocation4 + $0xc] sm:$0xf]  ;;  %vm3993_vm1 = vcmask 916480   ;;  %vm3995_vm12 = vmmov %vm3992_vm0 }
 0x286   : >> { %v1063_v62 = vsel %vm3104_vm10, %v1059_v21, 0  ;;  %v999_v4 = vld [vmem:[#allocation4 + $0x18] sm:$0xf]  ;;  %v1595_v46 = vsel %vm3047_vm8, %v1591_v58, 0  ;;  %vm3994_vm9 = vmmov %vm3993_vm1 }
 0x287   : >> { %v1003_v48 = vsel %vm3128_vm14, %v999_v4, 0  ;;  %vm3996_vm6 = vmmov %vm3992_vm0 }
 0x288   : >> { %1070 = vrot.lane.b32.xlu1 %v1061_v40, %s2920_s28  ;;  %1136 = vrot.lane.b32.xlu0 %v1128_v5, %s2921_s29  ;;  %v1597_v40 = vsel %vm3047_vm8, %v1593_v0, 0  ;;  %v1199_v5 = vpop.permute.xlu1 %1198  ;;  %vm3998_vm15 = vmmov %vm3997_vm13 }
 0x289   : >> { %v1205_v4 = vrot.slane %v1199_v5, 4 }
 0x28c   : >> { %1042 = vrot.lane.b32.xlu1 %v1031_v14, %s2927_s11  ;;  %1100 = vrot.lane.b32.xlu0 %v1092_v15, %s2922_s30  ;;  %v1203_v14 = vpop.permute.xlu1 %1202 }
 0x28d   : >> { %v1207_v26 = vrot.slane %v1203_v14, 4 }
 0x290   : >> { %1010 = vrot.lane.b32.xlu1 %v1001_v16, %s2925_s7  ;;  %1068 = vrot.lane.b32.xlu0 %v1060_v52, %s2920_s28  ;;  %v1171_v15 = vpop.permute.xlu1 %1170 }
 0x291   : >> { %v1177_v56 = vrot.slane %v1171_v15, 4 }
 0x294   : >> { %1106 = vrot.lane.b32.xlu1 %v1095_v19, %s2922_s30  ;;  %1200 = vrot.lane.b32.xlu0 %v3313_v53, %s2926_s8  ;;  %v1175_v39 = vpop.permute.xlu1 %1174 }
 0x298   : >> { %1074 = vrot.lane.b32.xlu1 %v1063_v62, %s2920_s28  ;;  %1040 = vrot.lane.b32.xlu0 %v1030_v22, %s2927_s11  ;;  %v1139_v16 = vpop.permute.xlu1 %1138 }
 0x299   : >> { %v1145_v0 = vrot.slane %v1139_v16, 4 }
 0x29c   : >> { %1230 = vrot.lane.b32.xlu1 %v1221_v3, %s2924_s6  ;;  %1172 = vrot.lane.b32.xlu0 %v1162_v11, %s2923_s5  ;;  %v1143_v52 = vpop.permute.xlu1 %1142 }
 0x29d   : >> { %v1147_v5 = vrot.slane %v1143_v52, 4 }
 0x2a0   : >> { %1014 = vrot.lane.b32.xlu1 %v1003_v48, %s2925_s7  ;;  %1140 = vrot.lane.b32.xlu0 %v1130_v24, %s2921_s29 }
 0x2a4   : >> { %1234 = vrot.lane.b32.xlu1 %v1223_v41, %s2924_s6  ;;  %1008 = vrot.lane.b32.xlu0 %v1000_v27, %s2925_s7 }
 0x2a8   : >> { %1664 = vrot.lane.b32.xlu1 %v1655_v2, %s2926_s8  ;;  %1104 = vrot.lane.b32.xlu0 %v1094_v13, %s2922_s30 }
 0x2ac   : >> { %1668 = vrot.lane.b32.xlu1 %v1657_v31, %s2926_s8  ;;  %1072 = vrot.lane.b32.xlu0 %v1062_v36, %s2920_s28 }
 0x2b0   : >> { %1636 = vrot.lane.b32.xlu1 %v1627_v45, %s2923_s5  ;;  %1228 = vrot.lane.b32.xlu0 %v1220_v47, %s2924_s6 }
 0x2b4   : >> { %1640 = vrot.lane.b32.xlu1 %v1629_v1, %s2923_s5  ;;  %1012 = vrot.lane.b32.xlu0 %v1002_v57, %s2925_s7  ;;  %v1179_v1 = vrot.slane %v1175_v39, 4 }
 0x2b8   : >> { %1604 = vrot.lane.b32.xlu1 %v1595_v46, %s2921_s29  ;;  %1232 = vrot.lane.b32.xlu0 %v1222_v63, %s2924_s6 }
 0x2bc   : >> { %1608 = vrot.lane.b32.xlu1 %v1597_v40, %s2921_s29 }
 0x2ea   : >> { %v1197_v18 = vpop.permute.xlu0 %1196 }
 0x2eb   : >> { %v1204_v44 = vrot.slane %v1197_v18, 4 }
 0x2ed   : >> { %v1208_v41 = vsel %vm3991_vm11, %v1204_v44, %v1205_v4  ;;  %vm3999_vm11 = vmmov %vm3992_vm0 }
 0x2ee   : >> { %v1209_v13 = vsel %vm3993_vm1, %v1197_v18, %v1208_v41  ;;  %vm4000_vm1 = vcmask 1039360  }
 0x2f2   : >> { %v3419_v19 = vpop.permute.xlu1 %1038  ;;  %v3421_v53 = vpop.permute.xlu0 %1036 }
 0x2f6   : >> { %v1169_v21 = vpop.permute.xlu0 %1168  ;;  %v1103_v62 = vpop.permute.xlu1 %1102 }
 0x2f7   : >> { %v1176_v32 = vrot.slane %v1169_v21, 4 }
 0x2f9   : >> { %v1180_v57 = vsel %vm3995_vm12, %v1176_v32, %v1177_v56  ;;  %vm4002_vm12 = vmmov %vm3992_vm0 }
 0x2fa   : >> { %v1137_v22 = vpop.permute.xlu0 %1136  ;;  %v3423_v60 = vpop.permute.xlu1 %1070  ;;  %v1181_v14 = vsel %vm3997_vm13, %v1169_v21, %v1180_v57  ;;  %vm4004_vm13 = vcmask 7168  }
 0x2fb   : >> { %v1144_v58 = vrot.slane %v1137_v22, 4  ;;  %v1077_v57 = vrot.slane %v3423_v60, 4 }
 0x2fd   : >> { %v1148_v15 = vsel %vm3999_vm11, %v1144_v58, %v1145_v0  ;;  %v1044_v58 = vrot.slane %v3421_v53, 4  ;;  %vm4006_vm11 = vmmov %vm4004_vm13 }
 0x2fe   : >> { %v3425_v3 = vpop.permute.xlu0 %1100  ;;  %v3429_v48 = vpop.permute.xlu1 %1042 }
 0x2ff   : >> { %v1108_v21 = vrot.slane %v3425_v3, 4 }
 0x302   : >> { %v3427_v11 = vpop.permute.xlu0 %1068  ;;  %v3432_v59 = vpop.permute.xlu1 %1010 }
 0x303   : >> { %v1076_v32 = vrot.slane %v3427_v11, 4 }
 0x306   : >> { %v1201_v24 = vpop.permute.xlu0 %1200  ;;  %v1107_v46 = vpop.permute.xlu1 %1106 }
 0x307   : >> { %v1206_v27 = vrot.slane %v1201_v24, 4  ;;  %v1111_v56 = vrot.slane %v1107_v46, 4 }
 0x309   : >> { %v1210_v2 = vsel %vm3992_vm0, %v1206_v27, %v1207_v26  ;;  %v1149_v27 = vsel %vm4000_vm1, %v1137_v22, %v1148_v15 }
 0x30a   : >> { %v1211_v31 = vsel %vm3994_vm9, %v1201_v24, %v1210_v2  ;;  %v3437_v36 = vpop.permute.xlu0 %1040  ;;  %v1075_v39 = vpop.permute.xlu1 %1074  ;;  %vm4001_vm9 = vmmov %vm4000_vm1 }
 0x30b   : >> { %v2732_v45 = vcombine.low %v1209_v13, %v1211_v31  ;;  %v2733_v47 = vcombine.high %v1209_v13, %v1211_v31  ;;  %v1109_v31 = vrot.slane %v1103_v62, 4  ;;  %v1046_v22 = vrot.slane %v3437_v36, 4  ;;  %vm4007_vm1 = vmmov %vm3992_vm0 }
 0x30c   : >> { %v1045_v62 = vrot.slane %v3419_v19, 4 }
 0x30d   : >> { %1371 = vmatprep.subr.bf16.mxu0 %v2733_v47  ;;  %v1112_v47 = vsel %vm4002_vm12, %v1108_v21, %v1109_v31  ;;  %vm4009_vm12 = vcmask 121856  }
 0x30e   : >> { %1372 = vmatpush1.bf16.msra.mxu0 %v2732_v45  ;;  %v1173_v37 = vpop.permute.xlu0 %1172  ;;  %v1113_v46 = vsel %vm4004_vm13, %v3425_v3, %v1112_v47  ;;  %vm4011_vm13 = vmmov %vm4009_vm12 }
 0x30f   : >> { %v1178_v63 = vrot.slane %v1173_v37, 4 }
 0x311   : >> { %v1182_v40 = vsel %vm3996_vm6, %v1178_v63, %v1179_v1  ;;  %v1047_v63 = vrot.slane %v3429_v48, 4  ;;  %vm4003_vm6 = vmmov %vm3992_vm0  ;;  %v1048_v48 = vsel %vm4007_vm1, %v1044_v58, %v1045_v62  ;;  %vm4014_vm1 = vcmask 138240  }
 0x312   : >> { %v1183_v18 = vsel %vm3998_vm15, %v1173_v37, %v1182_v40  ;;  %v1141_v4 = vpop.permute.xlu0 %1140  ;;  %v1231_v37 = vpop.permute.xlu1 %1230  ;;  %vm4005_vm15 = vmmov %vm3992_vm0 }
 0x313   : >> { %v2730_v44 = vcombine.low %v1181_v14, %v1183_v18  ;;  %v2731_v24 = vcombine.high %v1181_v14, %v1183_v18  ;;  %v1146_v26 = vrot.slane %v1141_v4, 4  ;;  %v1080_v40 = vsel %vm4005_vm15, %v1076_v32, %v1077_v57 }
 0x314   : >> { %v1050_v35 = vsel %vm3992_vm0, %v1046_v22, %v1047_v63  ;;  %v1237_v31 = vrot.slane %v1231_v37, 4 }
 0x315   : >> { %v1150_v41 = vsel %vm3992_vm0, %v1146_v26, %v1147_v5  ;;  %1373 = vmatprep.subr.bf16.mxu0 %v2731_v24  ;;  %v1079_v5 = vrot.slane %v1075_v39, 4  ;;  %v1017_v39 = vrot.slane %v3432_v59, 4 }
 0x316   : >> { %v1151_v16 = vsel %vm4001_vm9, %v1141_v4, %v1150_v41  ;;  %1374 = vmatpush1.bf16.msra.mxu0 %v2730_v44  ;;  %v1009_v52 = vpop.permute.xlu0 %1008  ;;  %v1015_v18 = vpop.permute.xlu1 %1014  ;;  %vm4008_vm9 = vmmov %vm3992_vm0  ;;  %v1081_v4 = vsel %vm4009_vm12, %v3427_v11, %v1080_v40 }
 0x317   : >> { %v2728_v2 = vcombine.low %v1149_v27, %v1151_v16  ;;  %v2729_v13 = vcombine.high %v1149_v27, %v1151_v16  ;;  %v1019_v11 = vrot.slane %v1015_v18, 4  ;;  %vm4016_vm12 = vmmov %vm3992_vm0 }
 0x319   : >> { %1375 = vmatprep.subr.bf16.mxu0 %v2729_v13 }
 0x31a   : >> { %1376 = vmatpush1.bf16.msra.mxu0 %v2728_v2  ;;  %v1105_v45 = vpop.permute.xlu0 %1104  ;;  %v1235_v16 = vpop.permute.xlu1 %1234 }
 0x31b   : >> { %v1110_v1 = vrot.slane %v1105_v45, 4  ;;  %1377 = vmatprep.subr.bf16.mxu0 %v2896_v54 }
 0x31d   : >> { %v1114_v0 = vsel %vm4003_vm6, %v1110_v1, %v1111_v56  ;;  %vm4010_vm6 = vcmask 130048  }
 0x31e   : >> { %v1115_v14 = vsel %vm4006_vm11, %v1105_v45, %v1114_v0  ;;  %1378 = vmatpush1.bf16.msra.mxu0 %v2897_v55  ;;  %v1073_v29 = vpop.permute.xlu0 %1072  ;;  %v1051_v15 = vsel %vm4010_vm6, %v3437_v36, %v1050_v35  ;;  %v1016_v55 = vrot.slane %v1009_v52, 4  ;;  %vm4012_vm15 = vmmov %vm4010_vm6  ;;  %v1239_v45 = vrot.slane %v1235_v16, 4 }
 0x31f   : >> { %v2724_v54 = vcombine.low %v1113_v46, %v1115_v14  ;;  %v2725_v19 = vcombine.high %v1113_v46, %v1115_v14  ;;  %v1078_v60 = vrot.slane %v1073_v29, 4  ;;  %v1049_v26 = vsel %vm4012_vm15, %v3421_v53, %v1048_v48  ;;  %vm4013_vm11 = vmmov %vm3992_vm0 }
 0x320   : >> { %v2721_v41 = vcombine.high %v1049_v26, %v1051_v15  ;;  %v1020_v36 = vsel %vm4013_vm11, %v1016_v55, %v1017_v39  ;;  %v2720_v13 = vcombine.low %v1049_v26, %v1051_v15  ;;  %vm4017_vm6 = vmmov %vm3992_vm0 }
 0x321   : >> { %v1082_v3 = vsel %vm4008_vm9, %v1078_v60, %v1079_v5  ;;  %1379 = vmatprep.subr.bf16.mxu0 %v2725_v19  ;;  %v1021_v53 = vsel %vm4014_vm1, %v1009_v52, %v1020_v36  ;;  %vm4015_vm9 = vmmov %vm4014_vm1  ;;  %v2881_v52 = vld [vmem:[%s3922_s2 + $0x10] ss:$8 sps:$4 sm:$0xff]  }
 0x322   : >> { %v1083_v28 = vsel %vm4011_vm13, %v1073_v29, %v1082_v3  ;;  %1380 = vmatpush1.bf16.msra.mxu0 %v2724_v54  ;;  %v1229_v50 = vpop.permute.xlu0 %1228  ;;  %vm4018_vm13 = vcmask 908288  }
 0x323   : >> { %v2722_v44 = vcombine.low %v1081_v4, %v1083_v28  ;;  %v2723_v24 = vcombine.high %v1081_v4, %v1083_v28  ;;  %v1236_v21 = vrot.slane %v1229_v50, 4  ;;  %vm4019_vm15 = vmmov %vm4018_vm13 }
 0x325   : >> { %1381 = vmatprep.subr.bf16.mxu0 %v2723_v24  ;;  %v1240_v56 = vsel %vm4016_vm12, %v1236_v21, %v1237_v31 }
 0x326   : >> { %1382 = vmatpush1.bf16.msra.mxu0 %v2722_v44  ;;  %v1013_v27 = vpop.permute.xlu0 %1012  ;;  %v1241_v58 = vsel %vm4018_vm13, %v1229_v50, %v1240_v56 }
 0x327   : >> { %v1018_v2 = vrot.slane %v1013_v27, 4  ;;  %1383 = vmatprep.subr.bf16.mxu0 %v2721_v41 }
 0x329   : >> { %v1022_v32 = vsel %vm3992_vm0, %v1018_v2, %v1019_v11 }
 0x32a   : >> { %v1023_v59 = vsel %vm4015_vm9, %v1013_v27, %v1022_v32  ;;  %1384 = vmatpush1.bf16.msra.mxu0 %v2720_v13  ;;  %v1233_v47 = vpop.permute.xlu0 %1232 }
 0x32b   : >> { %v2718_v22 = vcombine.low %v1021_v53, %v1023_v59  ;;  %v2719_v1 = vcombine.high %v1021_v53, %v1023_v59  ;;  %v1238_v57 = vrot.slane %v1233_v47, 4 }
 0x32d   : >> { %v1242_v62 = vsel %vm4017_vm6, %v1238_v57, %v1239_v45  ;;  %1385 = vmatprep.subr.bf16.mxu0 %v2719_v1 }
 0x32e   : >> { %v1243_v37 = vsel %vm4019_vm15, %v1233_v47, %v1242_v62  ;;  %1386 = vmatpush1.bf16.msra.mxu0 %v2718_v22 }
 0x32f   : >> { %v2734_v63 = vcombine.low %v1241_v58, %v1243_v37  ;;  %v2735_v0 = vcombine.high %v1241_v58, %v1243_v37 }
 0x331   : >> { %1401 = vmatprep.subr.bf16.mxu0 %v2735_v0 }
 0x332   : >> { %1402 = vmatpush2.bf16.msra.mxu0 %v2734_v63 }
 0x335   : >> { %1404 = vmatmul.mubr.bf16.vlgmr.msra.gmra.mxu0 %v2881_v52 }
 0x337   : >> { %v372_v46 = vpop.f32.mrf.mxu0 }
 0x338   : >> { %v415_v60 = vmul.f32 0.2, %v372_v46  ;;  %vm399_vm11 = vcmp.gt.f32.partialorder %v372_v46, 0.0 }
 0x339   : >> { %v374_v40 = vpop.f32.mrf.mxu0 }
 0x33a   : >> { %v416_v48 = vmul.f32 0.2, %v374_v40  ;;  %vm400_vm0 = vcmp.gt.f32.partialorder %v374_v40, 0.0  ;;  %v431_v50 = vsel %vm399_vm11, %v372_v46, %v415_v60  ;;  %vm4020_vm11 = vcmp.ne.s16.totalorder %v3081_v12, 0 }
 0x33b   : >> { %v376_v5 = vpop.f32.mrf.mxu0 }
 0x33c   : >> { %v432_v55 = vsel %vm400_vm0, %v374_v40, %v416_v48  ;;  %v417_v44 = vmul.f32 0.2, %v376_v5  ;;  %vm401_vm6 = vcmp.gt.f32.partialorder %v376_v5, 0.0  ;;  %vm4021_vm0 = vcmp.ne.s16.totalorder %v3096_v20, 0 }
 0x33d   : >> { %v378_v14 = vpop.f32.mrf.mxu0 }
 0x33e   : >> { %v418_v26 = vmul.f32 0.2, %v378_v14  ;;  %vm402_vm13 = vcmp.gt.f32.partialorder %v378_v14, 0.0  ;;  %v433_v31 = vsel %vm401_vm6, %v376_v5, %v417_v44  ;;  %vm4025_vm6 = vmmov %vm4021_vm0 }
 0x33f   : >> { %v3488_v29 = vpop.f32.mrf.mxu0 }
 0x340   : >> { %v434_v32 = vsel %vm402_vm13, %v378_v14, %v418_v26  ;;  %vm4026_vm13 = vcmp.ne.s16.totalorder %v3162_v51, 0 }
 0x341   : >> { %v3490_v35 = vpop.f32.mrf.mxu0 }
 0x343   : >> { %v3492_v54 = vpop.f32.mrf.mxu0 }
 0x345   : >> { %v3494_v19 = vpop.f32.mrf.mxu0 }
 0x3f5   : >> { %v1405_v18 = vpop.f32.mrf.mxu0 }
 0x3f6   : >> { %vm1414_vm1 = vcmp.gt.f32.partialorder %v1405_v18, 0.0  ;;  %v1418_v3 = vmul.f32 0.2, %v1405_v18 }
 0x3f7   : >> { %v1407_v4 = vpop.f32.mrf.mxu0 }
 0x3f8   : >> { %v1422_v15 = vsel %vm1414_vm1, %v1405_v18, %v1418_v3  ;;  %vm1415_vm9 = vcmp.gt.f32.partialorder %v1407_v4, 0.0  ;;  %v1419_v28 = vmul.f32 0.2, %v1407_v4  ;;  %vm4022_vm1 = vcmp.ne.s16.totalorder %v3111_v25, 0 }
 0x3f9   : >> { %v1409_v24 = vpop.f32.mrf.mxu0  ;;  %v3496_v27 = vadd.f32 %v1422_v15, %v431_v50  ;;  %v1683_v50 = vld [vmem:[#allocation4 + $0xc] sm:$0xf] }
 0x3fa   : >> { %v1423_v39 = vsel %vm1415_vm9, %v1407_v4, %v1419_v28  ;;  %vm1416_vm12 = vcmp.gt.f32.partialorder %v1409_v24, 0.0  ;;  %v1420_v41 = vmul.f32 0.2, %v1409_v24  ;;  %vm4023_vm9 = vcmp.ne.s16.totalorder %v3122_v30, 0 }
 0x3fb   : >> { %v3498_v11 = vadd.f32 %v1423_v39, %v432_v55  ;;  %v1411_v16 = vpop.f32.mrf.mxu0  ;;  %v1687_v55 = vsel %vm3146_vm5, %v1683_v50, 0 }
 0x3fc   : >> { %v1424_v36 = vsel %vm1416_vm12, %v1409_v24, %v1420_v41  ;;  %vm1417_vm15 = vcmp.gt.f32.partialorder %v1411_v16, 0.0  ;;  %v1421_v21 = vmul.f32 0.2, %v1411_v16  ;;  %vm4024_vm12 = vmmov %vm4020_vm11  ;;  %v1685_v41 = vld [vmem:[#allocation4 + $0x1c] sm:$0xf] }
 0x3fd   : >> { %v3502_v2 = vpack.c.bf16 %v3498_v11, %v3496_v27  ;;  %v3504_v13 = vpack.c.bf16 %v1424_v36, %v1422_v15  ;;  %v3507_v53 = vadd.f32 %v1424_v36, %v433_v31 }
 0x3fe   : >> { %v1425_v45 = vsel %vm1417_vm15, %v1411_v16, %v1421_v21  ;;  %v1689_v16 = vsel %vm3146_vm5, %v1685_v41, 0  ;;  %v2121_v21 = vld [vmem:[#allocation4 + $0xc] sm:$0xf]  ;;  %vm4027_vm15 = vmmov %vm4022_vm1 }
 0x3ff   : >> { %1460 = vst [vmem:[#allocation4 + $0x4] sm:$0xff] %v3502_v2  ;;  %v3509_v59 = vadd.f32 %v1425_v45, %v434_v32  ;;  %1662 = vrot.lane.b32.xlu0 %v3502_v2, %s2926_s8  ;;  %v3513_v47 = vpack.c.bf16 %v1425_v45, %v1423_v39  ;;  %v2899_v1 = vpack.c.bf16 %v3507_v53, %v3496_v27  ;;  %v1626_v63 = vsel %vm4020_vm11, %v3502_v2, 0  ;;  %v2123_v32 = vld [vmem:[#allocation4 + $0x1c] sm:$0xf]  ;;  %vm4028_vm11 = vmmov %vm4023_vm9 }
 0x400   : >> { %v1594_v46 = vsel %vm4021_vm0, %v3502_v2, 0  ;;  %vm4029_vm0 = vcmp.ne.s16.totalorder %v3184_v61, 0 }
 0x401   : >> { %v3517_v56 = vpack.c.bf16 %v3509_v59, %v3507_v53  ;;  %v2898_v22 = vpack.c.bf16 %v3509_v59, %v3498_v11 }
 0x403   : >> { %1461 = vst [vmem:[#allocation4 + $0x14] sm:$0xff] %v3517_v56  ;;  %v1628_v44 = vsel %vm4024_vm12, %v3517_v56, 0  ;;  %v1596_v39 = vsel %vm4025_vm6, %v3517_v56, 0  ;;  %vm4032_vm12 = vmmov %vm4029_vm0  ;;  %vm4035_vm6 = vcmask 916480  }
 0x406   : >> { %v1495_v57 = vld [vmem:[#allocation4 + $0x8] sm:$0xf]  ;;  %v1494_v62 = vld [vmem:[#allocation4] sm:$0xff] }
 0x407   : >> { %1504 = vrot.lane.b32.xlu1 %v1495_v57, %s2927_s11  ;;  %v1555_v58 = vld [vmem:[#allocation4 + $0x8] sm:$0xf]  ;;  %1502 = vrot.lane.b32.xlu0 %v1494_v62, %s2927_s11  ;;  %v1558_v5 = vsel %vm4022_vm1, %v1494_v62, 0  ;;  %v1526_v48 = vsel %vm4023_vm9, %v1494_v62, 0  ;;  %v1466_v36 = vsel %vm4026_vm13, %v1494_v62, 0  ;;  %vm4030_vm1 = vmmov %vm4026_vm13  ;;  %vm4031_vm9 = vcmask 130048  }
 0x408   : >> { %v1559_v37 = vsel %vm3088_vm4, %v1555_v58, 0  ;;  %v1523_v0 = vld [vmem:[#allocation4 + $0x8] sm:$0xf]  ;;  %v2089_v57 = vld [vmem:[#allocation4 + $0xc] sm:$0xf]  ;;  %v1686_v58 = vsel %vm4029_vm0, %v3502_v2, 0  ;;  %vm4036_vm13 = vmmov %vm4035_vm6 }
 0x409   : >> { %v1527_v52 = vsel %vm3104_vm10, %v1523_v0, 0  ;;  %v1463_v14 = vld [vmem:[#allocation4 + $0x8] sm:$0xf]  ;;  %v2093_v62 = vsel %vm3038_vm7, %v2089_v57, 0  ;;  %vm4039_vm0 = vcmask 924672  }
 0x40a   : >> { %v1497_v40 = vld [vmem:[#allocation4 + $0x18] sm:$0xf]  ;;  %v1467_v60 = vsel %vm3128_vm14, %v1463_v14, 0  ;;  %v1496_v28 = vld [vmem:[#allocation4 + $0x10] sm:$0xff]  ;;  %v1665_v14 = vpop.permute.xlu1 %1664 }
 0x40b   : >> { %1568 = vrot.lane.b32.xlu1 %v1559_v37, %s2922_s30  ;;  %1634 = vrot.lane.b32.xlu0 %v1626_v63, %s2923_s5  ;;  %v1557_v18 = vld [vmem:[#allocation4 + $0x18] sm:$0xf]  ;;  %v1560_v31 = vsel %vm4027_vm15, %v1496_v28, 0  ;;  %v1528_v45 = vsel %vm4028_vm11, %v1496_v28, 0  ;;  %v2091_v37 = vld [vmem:[#allocation4 + $0x1c] sm:$0xf] }
 0x40c   : >> { %v1561_v3 = vsel %vm3088_vm4, %v1557_v18, 0  ;;  %v1525_v4 = vld [vmem:[#allocation4 + $0x18] sm:$0xf]  ;;  %v2884_v63 = vld [vmem:[%s3922_s2 + $0x24] ss:$8 sps:$4 sm:$0xff]   ;;  %v2095_v0 = vsel %vm3038_vm7, %v2091_v37, 0 }
 0x40d   : >> { %v1529_v15 = vsel %vm3104_vm10, %v1525_v4, 0  ;;  %v1465_v24 = vld [vmem:[#allocation4 + $0x18] sm:$0xf]  ;;  %2763 = vmatprep.mubr.msk.bf16.mxu1 %vm4031_vm9, %v2884_v63  ;;  %vm4033_vm7 = vcmask 1043456  }
 0x40e   : >> { %v1469_v26 = vsel %vm3128_vm14, %v1465_v24, 0  ;;  %vm4037_vm15 = vmmov %vm4033_vm7 }
 0x40f   : >> { %1536 = vrot.lane.b32.xlu1 %v1527_v52, %s2920_s28  ;;  %1602 = vrot.lane.b32.xlu0 %v1594_v46, %s2921_s29  ;;  %v1468_v52 = vsel %vm4030_vm1, %v1496_v28, 0  ;;  %v2057_v46 = vld [vmem:[#allocation4 + $0xc] sm:$0xf]  ;;  %vm4038_vm11 = vmmov %vm4033_vm7 }
 0x410   : >> { %v2061_v2 = vsel %vm3047_vm8, %v2057_v46, 0  ;;  %vm4040_vm1 = vmmov %vm4039_vm0 }
 0x411   : >> { %vm4041_vm9 = vmmov %vm4033_vm7 }
 0x413   : >> { %1508 = vrot.lane.b32.xlu1 %v1497_v40, %s2927_s11  ;;  %1566 = vrot.lane.b32.xlu0 %v1558_v5, %s2922_s30  ;;  %v1688_v40 = vsel %vm4032_vm12, %v3517_v56, 0  ;;  %v2063_v5 = vsel %vm3047_vm8, %v2059_v43, 0  ;;  %vm4034_vm8 = vmmov %vm4033_vm7 }
 0x414   : >> { %vm4042_vm12 = vmmov %vm4033_vm7 }
 0x417   : >> { %1476 = vrot.lane.b32.xlu1 %v1467_v60, %s2925_s7  ;;  %1534 = vrot.lane.b32.xlu0 %v1526_v48, %s2920_s28  ;;  %v1669_v60 = vpop.permute.xlu1 %1668 }
 0x41b   : >> { %1572 = vrot.lane.b32.xlu1 %v1561_v3, %s2922_s30  ;;  %1666 = vrot.lane.b32.xlu0 %v3517_v56, %s2926_s8  ;;  %v1637_v48 = vpop.permute.xlu1 %1636 }
 0x41c   : >> { %v1643_v46 = vrot.slane %v1637_v48, 4 }
 0x41f   : >> { %1540 = vrot.lane.b32.xlu1 %v1529_v15, %s2920_s28  ;;  %1506 = vrot.lane.b32.xlu0 %v1496_v28, %s2927_s11  ;;  %v1641_v18 = vpop.permute.xlu1 %1640 }
 0x423   : >> { %1696 = vrot.lane.b32.xlu1 %v1687_v55, %s2924_s6  ;;  %1638 = vrot.lane.b32.xlu0 %v1628_v44, %s2923_s5  ;;  %v1605_v3 = vpop.permute.xlu1 %1604 }
 0x427   : >> { %1480 = vrot.lane.b32.xlu1 %v1469_v26, %s2925_s7  ;;  %1606 = vrot.lane.b32.xlu0 %v1596_v39, %s2921_s29  ;;  %v1609_v4 = vpop.permute.xlu1 %1608  ;;  %v1671_v39 = vrot.slane %v1665_v14, 4 }
 0x42b   : >> { %1700 = vrot.lane.b32.xlu1 %v1689_v16, %s2924_s6  ;;  %1474 = vrot.lane.b32.xlu0 %v1466_v36, %s2925_s7 }
 0x42f   : >> { %2130 = vrot.lane.b32.xlu1 %v2121_v21, %s2926_s8  ;;  %1570 = vrot.lane.b32.xlu0 %v1560_v31, %s2922_s30  ;;  %v1673_v21 = vrot.slane %v1669_v60, 4 }
 0x433   : >> { %2134 = vrot.lane.b32.xlu1 %v2123_v32, %s2926_s8  ;;  %1538 = vrot.lane.b32.xlu0 %v1528_v45, %s2920_s28 }
 0x437   : >> { %2102 = vrot.lane.b32.xlu1 %v2093_v62, %s2923_s5  ;;  %1694 = vrot.lane.b32.xlu0 %v1686_v58, %s2924_s6 }
 0x43b   : >> { %2106 = vrot.lane.b32.xlu1 %v2095_v0, %s2923_s5  ;;  %1478 = vrot.lane.b32.xlu0 %v1468_v52, %s2925_s7 }
 0x43f   : >> { %2070 = vrot.lane.b32.xlu1 %v2061_v2, %s2921_s29  ;;  %1698 = vrot.lane.b32.xlu0 %v1688_v40, %s2924_s6  ;;  %v1645_v40 = vrot.slane %v1641_v18, 4 }
 0x443   : >> { %2074 = vrot.lane.b32.xlu1 %v2063_v5, %s2921_s29 }
 0x471   : >> { %v1663_v15 = vpop.permute.xlu0 %1662 }
 0x472   : >> { %v1670_v41 = vrot.slane %v1663_v15, 4 }
 0x474   : >> { %v1674_v31 = vsel %vm4033_vm7, %v1670_v41, %v1671_v39  ;;  %v1611_v39 = vrot.slane %v1605_v3, 4  ;;  %v1613_v41 = vrot.slane %v1609_v4, 4  ;;  %vm4043_vm7 = vcmask 1039360  }
 0x475   : >> { %v1675_v62 = vsel %vm4035_vm6, %v1663_v15, %v1674_v31  ;;  %vm4045_vm6 = vmmov %vm4041_vm9 }
 0x479   : >> { %v3614_v28 = vpop.permute.xlu1 %1504  ;;  %v3616_v56 = vpop.permute.xlu0 %1502 }
 0x47d   : >> { %v1635_v50 = vpop.permute.xlu0 %1634  ;;  %v1569_v55 = vpop.permute.xlu1 %1568 }
 0x47e   : >> { %v1642_v63 = vrot.slane %v1635_v50, 4 }
 0x480   : >> { %v1646_v43 = vsel %vm4037_vm15, %v1642_v63, %v1643_v46  ;;  %v1575_v46 = vrot.slane %v1569_v55, 4  ;;  %v1511_v55 = vrot.slane %v3614_v28, 4  ;;  %vm4047_vm15 = vcmask 7168  }
 0x481   : >> { %v1603_v44 = vpop.permute.xlu0 %1602  ;;  %v3618_v24 = vpop.permute.xlu1 %1536 }
 0x482   : >> { %v1610_v5 = vrot.slane %v1603_v44, 4 }
 0x484   : >> { %v1614_v48 = vsel %vm4041_vm9, %v1610_v5, %v1611_v39 }
 0x485   : >> { %v3620_v49 = vpop.permute.xlu0 %1566  ;;  %v3624_v16 = vpop.permute.xlu1 %1508  ;;  %v1615_v63 = vsel %vm4043_vm7, %v1603_v44, %v1614_v48 }
 0x489   : >> { %v3622_v26 = vpop.permute.xlu0 %1534  ;;  %v3627_v45 = vpop.permute.xlu1 %1476 }
 0x48d   : >> { %v1667_v36 = vpop.permute.xlu0 %1666  ;;  %v1573_v14 = vpop.permute.xlu1 %1572 }
 0x48e   : >> { %v1672_v32 = vrot.slane %v1667_v36, 4  ;;  %v1577_v5 = vrot.slane %v1573_v14, 4 }
 0x490   : >> { %v1676_v57 = vsel %vm4034_vm8, %v1672_v32, %v1673_v21  ;;  %vm4044_vm8 = vmmov %vm4043_vm7  ;;  %vm4053_vm7 = vcmask 121856  }
 0x491   : >> { %v1677_v58 = vsel %vm4036_vm13, %v1667_v36, %v1676_v57  ;;  %v3632_v37 = vpop.permute.xlu0 %1506  ;;  %v1647_v36 = vsel %vm4039_vm0, %v1635_v50, %v1646_v43  ;;  %v1541_v18 = vpop.permute.xlu1 %1540  ;;  %v1574_v50 = vrot.slane %v3620_v49, 4  ;;  %vm4046_vm13 = vmmov %vm4045_vm6 }
 0x492   : >> { %v2759_v0 = vcombine.low %v1675_v62, %v1677_v58  ;;  %v2760_v52 = vcombine.high %v1675_v62, %v1677_v58  ;;  %v1512_v44 = vrot.slane %v3632_v37, 4  ;;  %v1545_v48 = vrot.slane %v1541_v18, 4  ;;  %vm4049_vm0 = vmmov %vm4047_vm15 }
 0x493   : >> { %v1578_v43 = vsel %vm4045_vm6, %v1574_v50, %v1575_v46  ;;  %v1483_v50 = vrot.slane %v3627_v45, 4 }
 0x494   : >> { %1837 = vmatprep.subr.bf16.mxu1 %v2760_v52  ;;  %v1579_v14 = vsel %vm4047_vm15, %v3620_v49, %v1578_v43 }
 0x495   : >> { %1838 = vmatpush1.bf16.msra.mxu1 %v2759_v0  ;;  %v1639_v2 = vpop.permute.xlu0 %1638 }
 0x496   : >> { %v1644_v60 = vrot.slane %v1639_v2, 4 }
 0x498   : >> { %v1648_v15 = vsel %vm4038_vm11, %v1644_v60, %v1645_v40  ;;  %v1697_v60 = vpop.permute.xlu1 %1696  ;;  %vm4048_vm11 = vmmov %vm4045_vm6 }
 0x499   : >> { %v1649_v21 = vsel %vm4040_vm1, %v1639_v2, %v1648_v15  ;;  %v1607_v31 = vpop.permute.xlu0 %1606  ;;  %v1542_v2 = vrot.slane %v3622_v26, 4  ;;  %v1543_v15 = vrot.slane %v3618_v24, 4  ;;  %vm4050_vm1 = vmmov %vm4045_vm6 }
 0x49a   : >> { %v2757_v32 = vcombine.low %v1647_v36, %v1649_v21  ;;  %v2758_v57 = vcombine.high %v1647_v36, %v1649_v21  ;;  %v1612_v62 = vrot.slane %v1607_v31, 4  ;;  %v1513_v36 = vrot.slane %v3624_v16, 4  ;;  %vm4051_vm9 = vmmov %vm4050_vm1 }
 0x49b   : >> { %vm4055_vm6 = vmmov %vm4053_vm7 }
 0x49c   : >> { %v1616_v58 = vsel %vm4042_vm12, %v1612_v62, %v1613_v41  ;;  %1839 = vmatprep.subr.bf16.mxu1 %v2758_v57  ;;  %v1510_v41 = vrot.slane %v3616_v56, 4  ;;  %v1516_v59 = vsel %vm4050_vm1, %v1512_v44, %v1513_v36  ;;  %v1481_v57 = vpop.permute.xlu1 %1480  ;;  %vm4052_vm12 = vmmov %vm4050_vm1 }
 0x49d   : >> { %v1617_v3 = vsel %vm4044_vm8, %v1607_v31, %v1616_v58  ;;  %1840 = vmatpush1.bf16.msra.mxu1 %v2757_v32  ;;  %v1475_v4 = vpop.permute.xlu0 %1474  ;;  %v1546_v31 = vsel %vm4048_vm11, %v1542_v2, %v1543_v15  ;;  %vm4054_vm8 = vcmask 130048   ;;  %vm4057_vm15 = vmmov %vm4050_vm1 }
 0x49e   : >> { %v2755_v0 = vcombine.low %v1615_v63, %v1617_v3  ;;  %v2756_v52 = vcombine.high %v1615_v63, %v1617_v3  ;;  %v1514_v16 = vsel %vm4051_vm9, %v1510_v41, %v1511_v55  ;;  %v1547_v62 = vsel %vm4053_vm7, %v3622_v26, %v1546_v31  ;;  %vm4058_vm11 = vmmov %vm4050_vm1 }
 0x49f   : >> { %v1517_v18 = vsel %vm4054_vm8, %v3632_v37, %v1516_v59  ;;  %v1485_v26 = vrot.slane %v1481_v57, 4  ;;  %vm4062_vm7 = vcmask 908288   ;;  %v420_v59 = vmul.f32 0.2, %v3490_v35 }
 0x4a0   : >> { %1841 = vmatprep.subr.bf16.mxu1 %v2756_v52  ;;  %v1701_v46 = vpop.permute.xlu1 %1700 }
 0x4a1   : >> { %1842 = vmatpush1.bf16.msra.mxu1 %v2755_v0  ;;  %v1571_v40 = vpop.permute.xlu0 %1570 }
 0x4a2   : >> { %v1576_v39 = vrot.slane %v1571_v40, 4  ;;  %1843 = vmatprep.subr.bf16.mxu1 %v2898_v22 }
 0x4a4   : >> { %v1580_v21 = vsel %vm4046_vm13, %v1576_v39, %v1577_v5  ;;  %vm4056_vm13 = vmmov %vm4054_vm8  ;;  %v1703_v5 = vrot.slane %v1697_v60, 4  ;;  %v1705_v39 = vrot.slane %v1701_v46, 4 }
 0x4a5   : >> { %v1581_v32 = vsel %vm4049_vm0, %v1571_v40, %v1580_v21  ;;  %1844 = vmatpush1.bf16.msra.mxu1 %v2899_v1  ;;  %v1539_v11 = vpop.permute.xlu0 %1538  ;;  %v1482_v1 = vrot.slane %v1475_v4, 4  ;;  %v1515_v3 = vsel %vm4056_vm13, %v3616_v56, %v1514_v16  ;;  %vm4059_vm0 = vcmask 138240   ;;  %vm4063_vm8 = vmmov %vm4062_vm7 }
 0x4a6   : >> { %v2751_v22 = vcombine.low %v1579_v14, %v1581_v32  ;;  %v2752_v28 = vcombine.high %v1579_v14, %v1581_v32  ;;  %v1544_v24 = vrot.slane %v1539_v11, 4  ;;  %v2748_v0 = vcombine.high %v1515_v3, %v1517_v18  ;;  %vm4060_vm1 = vmmov %vm4059_vm0 }
 0x4a7   : >> { %v1486_v37 = vsel %vm4057_vm15, %v1482_v1, %v1483_v50  ;;  %v2747_v43 = vcombine.low %v1515_v3, %v1517_v18  ;;  %vm404_vm13 = vcmp.gt.f32.partialorder %v3490_v35, 0.0  ;;  %v421_v18 = vmul.f32 0.2, %v3492_v54 }
 0x4a8   : >> { %v1548_v49 = vsel %vm4052_vm12, %v1544_v24, %v1545_v48  ;;  %1845 = vmatprep.subr.bf16.mxu1 %v2752_v28  ;;  %v1487_v56 = vsel %vm4059_vm0, %v1475_v4, %v1486_v37  ;;  %vm4061_vm12 = vmmov %vm4051_vm9  ;;  %v2886_v4 = vld [vmem:[%s3922_s2 + $0x20] ss:$8 sps:$4 sm:$0xff]  }
 0x4a9   : >> { %v1549_v27 = vsel %vm4055_vm6, %v1539_v11, %v1548_v49  ;;  %1846 = vmatpush1.bf16.msra.mxu1 %v2751_v22  ;;  %v1695_v53 = vpop.permute.xlu0 %1694  ;;  %v419_v11 = vmul.f32 0.2, %v3488_v29  ;;  %vm403_vm6 = vcmp.gt.f32.partialorder %v3488_v29, 0.0 }
 0x4aa   : >> { %v2749_v58 = vcombine.low %v1547_v62, %v1549_v27  ;;  %v2750_v63 = vcombine.high %v1547_v62, %v1549_v27  ;;  %v1702_v2 = vrot.slane %v1695_v53, 4  ;;  %v436_v62 = vsel %vm404_vm13, %v3490_v35, %v420_v59 }
 0x4ab   : >> { %v435_v49 = vsel %vm403_vm6, %v3488_v29, %v419_v11  ;;  %vm4066_vm6 = vcmp.ne.s16.totalorder %v3111_v25, 0  ;;  %vm4067_vm13 = vcmp.ne.s16.totalorder %v3122_v30, 0 }
 0x4ac   : >> { %1847 = vmatprep.subr.bf16.mxu1 %v2750_v63  ;;  %v1706_v55 = vsel %vm4051_vm9, %v1702_v2, %v1703_v5  ;;  %vm406_vm9 = vcmp.gt.f32.partialorder %v3494_v19, 0.0 }
 0x4ad   : >> { %1848 = vmatpush1.bf16.msra.mxu1 %v2749_v58  ;;  %v1479_v52 = vpop.permute.xlu0 %1478  ;;  %v1707_v31 = vsel %vm4062_vm7, %v1695_v53, %v1706_v55  ;;  %v422_v53 = vmul.f32 0.2, %v3494_v19  ;;  %vm4064_vm7 = vcmp.ne.s16.totalorder %v3081_v12, 0 }
 0x4ae   : >> { %v1484_v40 = vrot.slane %v1479_v52, 4  ;;  %1849 = vmatprep.subr.bf16.mxu1 %v2748_v0 }
 0x4af   : >> { %v438_v46 = vsel %vm406_vm9, %v3494_v19, %v422_v53 }
 0x4b0   : >> { %v1488_v44 = vsel %vm4058_vm11, %v1484_v40, %v1485_v26 }
 0x4b1   : >> { %v1489_v45 = vsel %vm4060_vm1, %v1479_v52, %v1488_v44  ;;  %1850 = vmatpush1.bf16.msra.mxu1 %v2747_v43  ;;  %v1699_v15 = vpop.permute.xlu0 %1698  ;;  %vm405_vm1 = vcmp.gt.f32.partialorder %v3492_v54, 0.0 }
 0x4b2   : >> { %v2745_v41 = vcombine.low %v1487_v56, %v1489_v45  ;;  %v2746_v36 = vcombine.high %v1487_v56, %v1489_v45  ;;  %v1704_v21 = vrot.slane %v1699_v15, 4  ;;  %v437_v26 = vsel %vm405_vm1, %v3492_v54, %v421_v18  ;;  %v2887_v18 = vld [vmem:[%s3922_s2 + $0x34] ss:$8 sps:$4 sm:$0xff]  }
 0x4b3   : >> { %vm4075_vm1 = vcmask 130048  }
 0x4b4   : >> { %v1708_v14 = vsel %vm4061_vm12, %v1704_v21, %v1705_v39  ;;  %1851 = vmatprep.subr.bf16.mxu1 %v2746_v36  ;;  %2790 = vmatprep.mubr.msk.bf16.mxu0 %vm4075_vm1, %v2887_v18 }
 0x4b5   : >> { %v1709_v60 = vsel %vm4063_vm8, %v1699_v15, %v1708_v14  ;;  %1852 = vmatpush1.bf16.msra.mxu1 %v2745_v41  ;;  %vm4065_vm8 = vcmp.ne.s16.totalorder %v3096_v20, 0 }
 0x4b6   : >> { %v2761_v48 = vcombine.low %v1707_v31, %v1709_v60  ;;  %v2762_v32 = vcombine.high %v1707_v31, %v1709_v60 }
 0x4b8   : >> { %1867 = vmatprep.subr.bf16.mxu1 %v2762_v32 }
 0x4b9   : >> { %1868 = vmatpush2.bf16.msra.mxu1 %v2761_v48 }
 0x4bc   : >> { %1870 = vmatmul.mubr.bf16.vlgmr.msra.gmra.mxu1 %v2886_v4 }
 0x4bd   : >> { %2502 = vmatprep.mubr.bf16.mxu1 %v2919_v10 }
 0x57c   : >> { %v1871_v22 = vpop.f32.mrf.mxu1 }
 0x57d   : >> { %vm1880_vm15 = vcmp.gt.f32.partialorder %v1871_v22, 0.0  ;;  %v1884_v28 = vmul.f32 0.2, %v1871_v22 }
 0x57e   : >> { %v1873_v24 = vpop.f32.mrf.mxu1 }
 0x57f   : >> { %v1888_v16 = vsel %vm1880_vm15, %v1871_v22, %v1884_v28  ;;  %vm1881_vm11 = vcmp.gt.f32.partialorder %v1873_v24, 0.0  ;;  %v1885_v57 = vmul.f32 0.2, %v1873_v24  ;;  %v2149_v28 = vld [vmem:[#allocation4 + $0xc] sm:$0xf]  ;;  %vm4068_vm15 = vmmov %vm4064_vm7 }
 0x580   : >> { %v1875_v27 = vpop.f32.mrf.mxu1  ;;  %v3694_v63 = vadd.f32 %v1888_v16, %v435_v49  ;;  %v2151_v49 = vld [vmem:[#allocation4 + $0x1c] sm:$0xf] }
 0x581   : >> { %v1889_v1 = vsel %vm1881_vm11, %v1873_v24, %v1885_v57  ;;  %vm1882_vm0 = vcmp.gt.f32.partialorder %v1875_v27, 0.0  ;;  %v1886_v58 = vmul.f32 0.2, %v1875_v27  ;;  %v2153_v24 = vsel %vm3146_vm5, %v2149_v28, 0  ;;  %vm4072_vm11 = vmmov %vm4067_vm13 }
 0x582   : >> { %v3696_v3 = vadd.f32 %v1889_v1, %v436_v62  ;;  %v1877_v50 = vpop.f32.mrf.mxu1  ;;  %v2155_v12 = vsel %vm3146_vm5, %v2151_v49, 0  ;;  %vm4073_vm5 = vcmp.ne.s16.totalorder %v3184_v61, 0 }
 0x583   : >> { %v1890_v29 = vsel %vm1882_vm0, %v1875_v27, %v1886_v58  ;;  %vm1883_vm12 = vcmp.gt.f32.partialorder %v1877_v50, 0.0  ;;  %v1887_v35 = vmul.f32 0.2, %v1877_v50  ;;  %vm4076_vm9 = vmmov %vm4073_vm5  ;;  %v2131_v27 = vpop.permute.xlu1 %2130 }
 0x584   : >> { %v3700_v0 = vpack.c.bf16 %v3696_v3, %v3694_v63  ;;  %v3702_v52 = vpack.c.bf16 %v1890_v29, %v1888_v16  ;;  %v3707_v2 = vadd.f32 %v1890_v29, %v437_v26 }
 0x585   : >> { %v1891_v37 = vsel %vm1883_vm12, %v1877_v50, %v1887_v35  ;;  %vm4077_vm12 = vcmask 1043456  }
 0x586   : >> { %1926 = vst [vmem:[#allocation4 + $0x4] sm:$0xff] %v3700_v0  ;;  %v3709_v40 = vadd.f32 %v1891_v37, %v438_v46  ;;  %2128 = vrot.lane.b32.xlu0 %v3700_v0, %s2926_s8  ;;  %v3713_v43 = vpack.c.bf16 %v1891_v37, %v1889_v1  ;;  %v2900_v54 = vpack.c.bf16 %v3707_v2, %v3694_v63  ;;  %v2092_v15 = vsel %vm4064_vm7, %v3700_v0, 0  ;;  %vm4078_vm7 = vmmov %vm4077_vm12 }
 0x587   : >> { %v2060_v36 = vsel %vm4065_vm8, %v3700_v0, 0  ;;  %v2152_v42 = vsel %vm4073_vm5, %v3700_v0, 0  ;;  %v2135_v53 = vpop.permute.xlu1 %2134  ;;  %vm4087_vm5 = vcmask 1039360   ;;  %vm4089_vm1 = vmmov %vm4078_vm7 }
 0x588   : >> { %v2828_v5 = vpack.c.bf16 %v3709_v40, %v3707_v2  ;;  %v2901_v19 = vpack.c.bf16 %v3709_v40, %v3696_v3 }
 0x58a   : >> { %1927 = vst [vmem:[#allocation4 + $0x14] sm:$0xff] %v2828_v5  ;;  %v2094_v17 = vsel %vm4068_vm15, %v2828_v5, 0  ;;  %v2154_v30 = vsel %vm4076_vm9, %v2828_v5, 0  ;;  %vm4082_vm15 = vmmov %vm4078_vm7 }
 0x58b   : >> { %v2103_v1 = vpop.permute.xlu1 %2102  ;;  %vm4090_vm9 = vmmov %vm4089_vm1 }
 0x58d   : >> { %v1961_v44 = vld [vmem:[#allocation4 + $0x8] sm:$0xf]  ;;  %v1960_v39 = vld [vmem:[#allocation4] sm:$0xff] }
 0x58e   : >> { %1970 = vrot.lane.b32.xlu1 %v1961_v44, %s2927_s11  ;;  %v2021_v56 = vld [vmem:[#allocation4 + $0x8] sm:$0xf]  ;;  %1968 = vrot.lane.b32.xlu0 %v1960_v39, %s2927_s11  ;;  %v2024_v14 = vsel %vm4066_vm6, %v1960_v39, 0  ;;  %v1992_v48 = vsel %vm4067_vm13, %v1960_v39, 0  ;;  %vm4081_vm13 = vmmov %vm4078_vm7 }
 0x58f   : >> { %v2025_v45 = vsel %vm3088_vm4, %v2021_v56, 0  ;;  %v1989_v55 = vld [vmem:[#allocation4 + $0x8] sm:$0xf]  ;;  %v2107_v58 = vpop.permute.xlu1 %2106 }
 0x590   : >> { %v1993_v41 = vsel %vm3104_vm10, %v1989_v55, 0  ;;  %v1929_v31 = vld [vmem:[#allocation4 + $0x8] sm:$0xf]  ;;  %v2139_v55 = vrot.slane %v2135_v53, 4  ;;  %v2111_v28 = vrot.slane %v2107_v58, 4 }
 0x591   : >> { %v1963_v21 = vld [vmem:[#allocation4 + $0x18] sm:$0xf]  ;;  %v1933_v60 = vsel %vm3128_vm14, %v1929_v31, 0  ;;  %v1962_v22 = vld [vmem:[#allocation4 + $0x10] sm:$0xff] }
 0x592   : >> { %2034 = vrot.lane.b32.xlu1 %v2025_v45, %s2922_s30  ;;  %2100 = vrot.lane.b32.xlu0 %v2092_v15, %s2923_s5  ;;  %v2023_v32 = vld [vmem:[#allocation4 + $0x18] sm:$0xf]  ;;  %v1994_v20 = vsel %vm4072_vm11, %v1962_v22, 0  ;;  %vm4086_vm11 = vmmov %vm4078_vm7 }
 0x593   : >> { %v2027_v4 = vsel %vm3088_vm4, %v2023_v32, 0  ;;  %v1991_v11 = vld [vmem:[#allocation4 + $0x18] sm:$0xf]  ;;  %vm4069_vm4 = vmmov %vm4065_vm8  ;;  %v2071_v50 = vpop.permute.xlu1 %2070  ;;  %vm4079_vm8 = vcmask 916480  }
 0x594   : >> { %v1995_v59 = vsel %vm3104_vm10, %v1991_v11, 0  ;;  %v1931_v16 = vld [vmem:[#allocation4 + $0x18] sm:$0xf]  ;;  %v2062_v57 = vsel %vm4069_vm4, %v2828_v5, 0  ;;  %vm4070_vm10 = vcmp.ne.s16.totalorder %v3162_v51, 0  ;;  %vm4083_vm4 = vcmask 924672  }
 0x595   : >> { %v1935_v23 = vsel %vm3128_vm14, %v1931_v16, 0  ;;  %v1932_v62 = vsel %vm4070_vm10, %v1960_v39, 0  ;;  %vm4071_vm14 = vmmov %vm4066_vm6  ;;  %v2137_v39 = vrot.slane %v2131_v27, 4 }
 0x596   : >> { %2002 = vrot.lane.b32.xlu1 %v1993_v41, %s2920_s28  ;;  %2068 = vrot.lane.b32.xlu0 %v2060_v36, %s2921_s29  ;;  %v2026_v33 = vsel %vm4071_vm14, %v1962_v22, 0  ;;  %vm4074_vm0 = vmmov %vm4070_vm10 }
 0x597   : >> { %v1934_v25 = vsel %vm4074_vm0, %v1962_v22, 0  ;;  %v2075_v29 = vpop.permute.xlu1 %2074  ;;  %vm4080_vm6 = vmmov %vm4079_vm8 }
 0x598   : >> { %vm4084_vm10 = vmmov %vm4083_vm4 }
 0x599   : >> { %vm4085_vm14 = vmmov %vm4078_vm7 }
 0x59a   : >> { %1974 = vrot.lane.b32.xlu1 %v1963_v21, %s2927_s11  ;;  %2032 = vrot.lane.b32.xlu0 %v2024_v14, %s2922_s30  ;;  %vm4088_vm0 = vmmov %vm4087_vm5 }
 0x59e   : >> { %1942 = vrot.lane.b32.xlu1 %v1933_v60, %s2925_s7  ;;  %2000 = vrot.lane.b32.xlu0 %v1992_v48, %s2920_s28 }
 0x5a2   : >> { %2038 = vrot.lane.b32.xlu1 %v2027_v4, %s2922_s30  ;;  %2132 = vrot.lane.b32.xlu0 %v2828_v5, %s2926_s8 }
 0x5a6   : >> { %2006 = vrot.lane.b32.xlu1 %v1995_v59, %s2920_s28  ;;  %1972 = vrot.lane.b32.xlu0 %v1962_v22, %s2927_s11  ;;  %v2109_v59 = vrot.slane %v2103_v1, 4 }
 0x5aa   : >> { %2162 = vrot.lane.b32.xlu1 %v2153_v24, %s2924_s6  ;;  %2104 = vrot.lane.b32.xlu0 %v2094_v17, %s2923_s5 }
 0x5ae   : >> { %1946 = vrot.lane.b32.xlu1 %v1935_v23, %s2925_s7  ;;  %2072 = vrot.lane.b32.xlu0 %v2062_v57, %s2921_s29  ;;  %v2077_v57 = vrot.slane %v2071_v50, 4 }
 0x5b2   : >> { %2166 = vrot.lane.b32.xlu1 %v2155_v12, %s2924_s6  ;;  %1940 = vrot.lane.b32.xlu0 %v1932_v62, %s2925_s7  ;;  %v2079_v12 = vrot.slane %v2075_v29, 4 }
 0x5b6   : >> { %2036 = vrot.lane.b32.xlu0 %v2026_v33, %s2922_s30 }
 0x5ba   : >> { %2004 = vrot.lane.b32.xlu0 %v1994_v20, %s2920_s28 }
 0x5be   : >> { %2160 = vrot.lane.b32.xlu0 %v2152_v42, %s2924_s6 }
 0x5c2   : >> { %1944 = vrot.lane.b32.xlu0 %v1934_v25, %s2925_s7 }
 0x5c6   : >> { %2164 = vrot.lane.b32.xlu0 %v2154_v30, %s2924_s6 }
 0x5f8   : >> { %v2129_v35 = vpop.permute.xlu0 %2128 }
 0x5f9   : >> { %v2136_v56 = vrot.slane %v2129_v35, 4 }
 0x5fb   : >> { %v2140_v41 = vsel %vm4077_vm12, %v2136_v56, %v2137_v39  ;;  %vm4091_vm12 = vcmask 7168  }
 0x5fc   : >> { %v2141_v31 = vsel %vm4079_vm8, %v2129_v35, %v2140_v41  ;;  %vm4093_vm8 = vmmov %vm4091_vm12 }
 0x600   : >> { %v3793_v0 = vpop.permute.xlu1 %1970  ;;  %v3795_v51 = vpop.permute.xlu0 %1968 }
 0x604   : >> { %v2101_v26 = vpop.permute.xlu0 %2100  ;;  %v2035_v46 = vpop.permute.xlu1 %2034 }
 0x605   : >> { %v2108_v32 = vrot.slane %v2101_v26, 4  ;;  %v2041_v39 = vrot.slane %v2035_v46, 4  ;;  %v1977_v46 = vrot.slane %v3793_v0, 4 }
 0x607   : >> { %v2112_v24 = vsel %vm4081_vm13, %v2108_v32, %v2109_v59  ;;  %vm4095_vm13 = vmmov %vm4089_vm1 }
 0x608   : >> { %v2069_v37 = vpop.permute.xlu0 %2068  ;;  %v3797_v44 = vpop.permute.xlu1 %2002  ;;  %v2113_v62 = vsel %vm4083_vm4, %v2101_v26, %v2112_v24  ;;  %vm4097_vm4 = vcmask 121856  }
 0x609   : >> { %v2076_v17 = vrot.slane %v2069_v37, 4 }
 0x60b   : >> { %v2080_v42 = vsel %vm4085_vm14, %v2076_v17, %v2077_v57  ;;  %vm4099_vm14 = vmmov %vm4097_vm4 }
 0x60c   : >> { %v3799_v61 = vpop.permute.xlu0 %2032  ;;  %v3803_v45 = vpop.permute.xlu1 %1974  ;;  %v2081_v1 = vsel %vm4087_vm5, %v2069_v37, %v2080_v42  ;;  %vm4101_vm5 = vmmov %vm4089_vm1 }
 0x60d   : >> { %v2040_v29 = vrot.slane %v3799_v61, 4  ;;  %v1979_v32 = vrot.slane %v3803_v45, 4 }
 0x610   : >> { %v3801_v5 = vpop.permute.xlu0 %2000  ;;  %v3806_v21 = vpop.permute.xlu1 %1942 }
 0x611   : >> { %v2008_v56 = vrot.slane %v3801_v5, 4 }
 0x614   : >> { %v2133_v15 = vpop.permute.xlu0 %2132  ;;  %v2039_v16 = vpop.permute.xlu1 %2038 }
 0x615   : >> { %v2138_v36 = vrot.slane %v2133_v15, 4  ;;  %v2043_v41 = vrot.slane %v2039_v16, 4 }
 0x617   : >> { %v2142_v14 = vsel %vm4078_vm7, %v2138_v36, %v2139_v55  ;;  %v2044_v55 = vsel %vm4089_vm1, %v2040_v29, %v2041_v39  ;;  %vm4092_vm7 = vmmov %vm4089_vm1 }
 0x618   : >> { %v2143_v60 = vsel %vm4080_vm6, %v2133_v15, %v2142_v14  ;;  %v3811_v48 = vpop.permute.xlu0 %1972  ;;  %v2007_v27 = vpop.permute.xlu1 %2006  ;;  %vm4094_vm6 = vmmov %vm4089_vm1 }
 0x619   : >> { %v2786_v4 = vcombine.low %v2141_v31, %v2143_v60  ;;  %v2787_v11 = vcombine.high %v2141_v31, %v2143_v60  ;;  %v1978_v37 = vrot.slane %v3811_v48, 4  ;;  %v2009_v31 = vrot.slane %v3797_v44, 4 }
 0x61a   : >> { %v1976_v60 = vrot.slane %v3795_v51, 4 }
 0x61b   : >> { %2303 = vmatprep.subr.bf16.mxu0 %v2787_v11  ;;  %v2045_v11 = vsel %vm4091_vm12, %v3799_v61, %v2044_v55  ;;  %v2012_v59 = vsel %vm4092_vm7, %v2008_v56, %v2009_v31  ;;  %v1982_v40 = vsel %vm4094_vm6, %v1978_v37, %v1979_v32 }
 0x61c   : >> { %2304 = vmatpush1.bf16.msra.mxu0 %v2786_v4  ;;  %v2105_v22 = vpop.permute.xlu0 %2104  ;;  %v2163_v36 = vpop.permute.xlu1 %2162  ;;  %v1980_v45 = vsel %vm4095_vm13, %v1976_v60, %v1977_v46  ;;  %v2013_v17 = vsel %vm4097_vm4, %v3801_v5, %v2012_v59 }
 0x61d   : >> { %v2110_v23 = vrot.slane %v2105_v22, 4 }
 0x61f   : >> { %v2114_v49 = vsel %vm4082_vm15, %v2110_v23, %v2111_v28  ;;  %vm4096_vm15 = vmmov %vm4089_vm1 }
 0x620   : >> { %v2115_v33 = vsel %vm4084_vm10, %v2105_v22, %v2114_v49  ;;  %v2073_v20 = vpop.permute.xlu0 %2072  ;;  %v2011_v22 = vrot.slane %v2007_v27, 4  ;;  %v1947_v24 = vpop.permute.xlu1 %1946  ;;  %vm4098_vm10 = vcmask 130048  }
 0x621   : >> { %v2784_v18 = vcombine.low %v2113_v62, %v2115_v33  ;;  %v2785_v25 = vcombine.high %v2113_v62, %v2115_v33  ;;  %v2078_v30 = vrot.slane %v2073_v20, 4  ;;  %v1983_v16 = vsel %vm4098_vm10, %v3811_v48, %v1982_v40 }
 0x622   : >> { %v1951_v5 = vrot.slane %v1947_v24, 4 }
 0x623   : >> { %v2082_v53 = vsel %vm4086_vm11, %v2078_v30, %v2079_v12  ;;  %2305 = vmatprep.subr.bf16.mxu0 %v2785_v25  ;;  %vm4100_vm11 = vmmov %vm4098_vm10  ;;  %v1949_v12 = vrot.slane %v3806_v21, 4  ;;  %v2169_v30 = vrot.slane %v2163_v36, 4 }
 0x624   : >> { %v2083_v58 = vsel %vm4088_vm0, %v2073_v20, %v2082_v53  ;;  %2306 = vmatpush1.bf16.msra.mxu0 %v2784_v18  ;;  %v1941_v50 = vpop.permute.xlu0 %1940  ;;  %v1981_v49 = vsel %vm4100_vm11, %v3795_v51, %v1980_v45  ;;  %v2167_v20 = vpop.permute.xlu1 %2166  ;;  %vm4102_vm0 = vmmov %vm4089_vm1  ;;  %vm4103_vm1 = vcmask 138240  }
 0x625   : >> { %v2782_v35 = vcombine.low %v2081_v1, %v2083_v58  ;;  %v2783_v26 = vcombine.high %v2081_v1, %v2083_v58  ;;  %v2775_v62 = vcombine.high %v1981_v49, %v1983_v16  ;;  %v2774_v25 = vcombine.low %v1981_v49, %v1983_v16  ;;  %vm4105_vm12 = vmmov %vm4102_vm0 }
 0x626   : >> { %v2171_v53 = vrot.slane %v2167_v20, 4  ;;  %vm4106_vm7 = vmmov %vm4102_vm0 }
 0x627   : >> { %2307 = vmatprep.subr.bf16.mxu0 %v2783_v26 }
 0x628   : >> { %2308 = vmatpush1.bf16.msra.mxu0 %v2782_v35  ;;  %v2037_v15 = vpop.permute.xlu0 %2036 }
 0x629   : >> { %v2042_v14 = vrot.slane %v2037_v15, 4  ;;  %2309 = vmatprep.subr.bf16.mxu0 %v2901_v19 }
 0x62b   : >> { %v2046_v4 = vsel %vm4090_vm9, %v2042_v14, %v2043_v41  ;;  %vm4104_vm9 = vmmov %vm4103_vm1 }
 0x62c   : >> { %v2047_v28 = vsel %vm4093_vm8, %v2037_v15, %v2046_v4  ;;  %2310 = vmatpush1.bf16.msra.mxu0 %v2900_v54  ;;  %v2005_v3 = vpop.permute.xlu0 %2004  ;;  %v1948_v54 = vrot.slane %v1941_v50, 4  ;;  %vm4107_vm8 = vcmask 908288  }
 0x62d   : >> { %v2778_v19 = vcombine.low %v2045_v11, %v2047_v28  ;;  %v2779_v0 = vcombine.high %v2045_v11, %v2047_v28  ;;  %v2010_v44 = vrot.slane %v2005_v3, 4  ;;  %vm4108_vm6 = vmmov %vm4107_vm8 }
 0x62e   : >> { %v1952_v48 = vsel %vm4101_vm5, %v1948_v54, %v1949_v12 }
 0x62f   : >> { %v2014_v61 = vsel %vm4096_vm15, %v2010_v44, %v2011_v22  ;;  %2311 = vmatprep.subr.bf16.mxu0 %v2779_v0  ;;  %v1953_v51 = vsel %vm4103_vm1, %v1941_v50, %v1952_v48  ;;  %v2889_v50 = vld [vmem:[%s3922_s2 + $0x30] ss:$8 sps:$4 sm:$0xff]  }
 0x630   : >> { %v2015_v63 = vsel %vm4099_vm14, %v2005_v3, %v2014_v61  ;;  %2312 = vmatpush1.bf16.msra.mxu0 %v2778_v19  ;;  %v2161_v2 = vpop.permute.xlu0 %2160  ;;  %vm4109_vm14 = vcmask 523264  }
 0x631   : >> { %v2776_v23 = vcombine.low %v2013_v17, %v2015_v63  ;;  %v2777_v57 = vcombine.high %v2013_v17, %v2015_v63  ;;  %v2168_v42 = vrot.slane %v2161_v2, 4  ;;  %vm4110_vm11 = vmmov %vm4109_vm14 }
 0x632   : >> { %vm4111_vm5 = vmmov %vm4110_vm11 }
 0x633   : >> { %2313 = vmatprep.subr.bf16.mxu0 %v2777_v57  ;;  %v2172_v58 = vsel %vm4105_vm12, %v2168_v42, %v2169_v30 }
 0x634   : >> { %2314 = vmatpush1.bf16.msra.mxu0 %v2776_v23  ;;  %v1945_v33 = vpop.permute.xlu0 %1944  ;;  %v2173_v56 = vsel %vm4107_vm8, %v2161_v2, %v2172_v58 }
 0x635   : >> { %v1950_v18 = vrot.slane %v1945_v33, 4  ;;  %2315 = vmatprep.subr.bf16.mxu0 %v2775_v62 }
 0x637   : >> { %v1954_v27 = vsel %vm4102_vm0, %v1950_v18, %v1951_v5  ;;  %vm4112_vm0 = vmmov %vm4111_vm5 }
 0x638   : >> { %v1955_v21 = vsel %vm4104_vm9, %v1945_v33, %v1954_v27  ;;  %2316 = vmatpush1.bf16.msra.mxu0 %v2774_v25  ;;  %v2165_v1 = vpop.permute.xlu0 %2164 }
 0x639   : >> { %v2772_v29 = vcombine.low %v1953_v51, %v1955_v21  ;;  %v2773_v35 = vcombine.high %v1953_v51, %v1955_v21  ;;  %v2170_v26 = vrot.slane %v2165_v1, 4 }
 0x63b   : >> { %v2174_v39 = vsel %vm4106_vm7, %v2170_v26, %v2171_v53  ;;  %2317 = vmatprep.subr.bf16.mxu0 %v2773_v35 }
 0x63c   : >> { %v2175_v15 = vsel %vm4108_vm6, %v2165_v1, %v2174_v39  ;;  %2318 = vmatpush1.bf16.msra.mxu0 %v2772_v29 }
 0x63d   : >> { %v2788_v55 = vcombine.low %v2173_v56, %v2175_v15  ;;  %v2789_v41 = vcombine.high %v2173_v56, %v2175_v15 }
 0x63f   : >> { %2333 = vmatprep.subr.bf16.mxu0 %v2789_v41 }
 0x640   : >> { %2334 = vmatpush2.bf16.msra.mxu0 %v2788_v55 }
 0x643   : >> { %2336 = vmatmul.mubr.bf16.vlgmr.msra.gmra.mxu0 %v2889_v50 }
 0x644   : >> { %2492 = vmatprep.mubr.bf16.mxu0 %v2919_v10 }
 0x703   : >> { %v2337_v36 = vpop.f32.mrf.mxu0 }
 0x704   : >> { %v2350_v60 = vmul.f32 0.2, %v2337_v36  ;;  %vm2346_vm4 = vcmp.gt.f32.partialorder %v2337_v36, 0.0 }
 0x705   : >> { %v2339_v37 = vpop.f32.mrf.mxu0 }
 0x706   : >> { %v2351_v31 = vmul.f32 0.2, %v2339_v37  ;;  %vm2347_vm15 = vcmp.gt.f32.partialorder %v2339_v37, 0.0  ;;  %v2354_v28 = vsel %vm2346_vm4, %v2337_v36, %v2350_v60 }
 0x707   : >> { %v2341_v14 = vpop.f32.mrf.mxu0 }
 0x708   : >> { %vm2348_vm13 = vcmp.gt.f32.partialorder %v2341_v14, 0.0  ;;  %v2352_v46 = vmul.f32 0.2, %v2341_v14  ;;  %v2355_v59 = vsel %vm2347_vm15, %v2339_v37, %v2351_v31 }
 0x709   : >> { %v2343_v32 = vpop.f32.mrf.mxu0 }
 0x70a   : >> { %vm2349_vm10 = vcmp.gt.f32.partialorder %v2343_v32, 0.0  ;;  %v2353_v4 = vmul.f32 0.2, %v2343_v32  ;;  %v2356_v11 = vsel %vm2348_vm13, %v2341_v14, %v2352_v46 }
 0x70b   : >> { %v2838_v40 = vpack.c.bf16 %v2356_v11, %v2354_v28 }
 0x70c   : >> { %v2357_v22 = vsel %vm2349_vm10, %v2343_v32, %v2353_v4 }
 0x70d   : >> { %v2839_v3 = vpack.c.bf16 %v2357_v22, %v2355_v59 }
 0x70f   : >> { %2468 = vmatprep.subr.bf16.mxu0 %v2839_v3  ;;  %2840 = vmatprep.subr.bf16.mxu1 %v2839_v3 }
 0x710   : >> { %2469 = vmatpush1.bf16.msra.mxu0 %v2838_v40  ;;  %2844 = vmatpush1.bf16.msra.mxu1 %v2838_v40 }
 0x711   : >> { %2470 = vmatprep.subr.bf16.mxu0 %v3713_v43  ;;  %2841 = vmatprep.subr.bf16.mxu1 %v3713_v43  ;;  %v2890_v43 = vld [vmem:[%s3923_s3 + $0x8] sm:$0xff]  }
 0x714   : >> { %2471 = vmatpush1.bf16.msra.mxu0 %v3702_v52  ;;  %2845 = vmatpush1.bf16.msra.mxu1 %v3702_v52  ;;  %v2891_v52 = vld [vmem:[%s3923_s3] sm:$0xff]  }
 0x715   : >> { %2472 = vmatprep.subr.bf16.mxu0 %v3513_v47  ;;  %2842 = vmatprep.subr.bf16.mxu1 %v3513_v47 }
 0x718   : >> { %2473 = vmatpush1.bf16.msra.mxu0 %v3504_v13  ;;  %2846 = vmatpush1.bf16.msra.mxu1 %v3504_v13  ;;  %v2893_v13 = vld [vmem:[%s3923_s3 + $0x18] sm:$0xff]  }
 0x719   : >> { %2474 = vmatprep.subr.bf16.mxu0 %v3309_v38  ;;  %2843 = vmatprep.subr.bf16.mxu1 %v3309_v38  ;;  %v2892_v38 = vld [vmem:[%s3923_s3 + $0x10] sm:$0xff]  }
 0x71c   : >> { %2475 = vmatpush1.bf16.msra.mxu0 %v3300_v34  ;;  %2847 = vmatpush1.bf16.msra.mxu1 %v3300_v34 }
 0x71f   : >> { %2806 = vmatmul.mubr.msk.bf16.vlgmr.msra.gmra.mxu1 %vm4109_vm14, %v2890_v43  ;;  %2805 = vmatmul.mubr.msk.bf16.vlgmr.msra.gmra.mxu0 %vm4110_vm11, %v2891_v52 }
 0x720   : >> { %2512 = vmatprep.mubr.bf16.mxu1 %v2919_v10 }
 0x727   : >> { %2807 = vmatmul.mubr.msk.bf16.gmra.mxu1 %vm4111_vm5, %v2892_v38 }
 0x728   : >> { %2522 = vmatprep.mubr.bf16.mxu1 %v2919_v10 }
 0x72f   : >> { %2808 = vmatmul.mubr.msk.bf16.gmra.mxu1 %vm4112_vm0, %v2893_v13 }
 0x7df   : >> { %v2504_v34 = vpop.f32.mrf.mxu1  ;;  %v2494_v47 = vpop.f32.mrf.mxu0 }
 0x7e0   : >> { %vm2537_vm1 = vcmp.gt.f32.partialorder %v2504_v34, 0.0  ;;  %v2553_v19 = vmul.f32 0.2, %v2504_v34  ;;  %vm2533_vm9 = vcmp.gt.f32.partialorder %v2494_v47, 0.0  ;;  %v2549_v0 = vmul.f32 0.2, %v2494_v47 }
 0x7e1   : >> { %v2506_v44 = vpop.f32.mrf.mxu1  ;;  %v2496_v10 = vpop.f32.mrf.mxu0 }
 0x7e2   : >> { %v2569_v45 = vsel %vm2537_vm1, %v2504_v34, %v2553_v19  ;;  %vm2538_vm12 = vcmp.gt.f32.partialorder %v2506_v44, 0.0  ;;  %v2554_v24 = vmul.f32 0.2, %v2506_v44  ;;  %v2565_v61 = vsel %vm2533_vm9, %v2494_v47, %v2549_v0 }
 0x7e3   : >> { %2587 = vst [vmem:[%s3896_s23 + $0x20] sm:$0xff] %v2569_v45  ;;  %v2508_v17 = vpop.f32.mrf.mxu1  ;;  %2583 = vst [vmem:[%s3896_s23] sm:$0xff] %v2565_v61  ;;  %vm2534_vm7 = vcmp.gt.f32.partialorder %v2496_v10, 0.0  ;;  %v2550_v16 = vmul.f32 0.2, %v2496_v10  ;;  %v2498_v63 = vpop.f32.mrf.mxu0 }
 0x7e4   : >> { %v2570_v2 = vsel %vm2538_vm12, %v2506_v44, %v2554_v24  ;;  %vm2539_vm8 = vcmp.gt.f32.partialorder %v2508_v17, 0.0  ;;  %v2555_v54 = vmul.f32 0.2, %v2508_v17  ;;  %vm2535_vm6 = vcmp.gt.f32.partialorder %v2498_v63, 0.0 }
 0x7e5   : >> { %2588 = vst [vmem:[%s3896_s23 + $0x28] sm:$0xff] %v2570_v2  ;;  %v2510_v23 = vpop.f32.mrf.mxu1  ;;  %v2566_v57 = vsel %vm2534_vm7, %v2496_v10, %v2550_v16  ;;  %v2551_v49 = vmul.f32 0.2, %v2498_v63  ;;  %v2500_v12 = vpop.f32.mrf.mxu0 }
 0x7e6   : >> { %v2571_v62 = vsel %vm2539_vm8, %v2508_v17, %v2555_v54  ;;  %vm2540_vm13 = vcmp.gt.f32.partialorder %v2510_v23, 0.0  ;;  %v2556_v33 = vmul.f32 0.2, %v2510_v23  ;;  %2584 = vst [vmem:[%s3896_s23 + $0x8] sm:$0xff] %v2566_v57  ;;  %vm2536_vm15 = vcmp.gt.f32.partialorder %v2500_v12, 0.0 }
 0x7e7   : >> { %2589 = vst [vmem:[%s3896_s23 + $0x30] sm:$0xff] %v2571_v62  ;;  %v2514_v5 = vpop.f32.mrf.mxu1  ;;  %v2567_v20 = vsel %vm2535_vm6, %v2498_v63, %v2551_v49  ;;  %v2552_v48 = vmul.f32 0.2, %v2500_v12 }
 0x7e8   : >> { %v2572_v42 = vsel %vm2540_vm13, %v2510_v23, %v2556_v33  ;;  %vm2541_vm4 = vcmp.gt.f32.partialorder %v2514_v5, 0.0  ;;  %v2557_v18 = vmul.f32 0.2, %v2514_v5  ;;  %2585 = vst [vmem:[%s3896_s23 + $0x10] sm:$0xff] %v2567_v20 }
 0x7e9   : >> { %2590 = vst [vmem:[%s3896_s23 + $0x38] sm:$0xff] %v2572_v42  ;;  %v2516_v25 = vpop.f32.mrf.mxu1  ;;  %v2568_v30 = vsel %vm2536_vm15, %v2500_v12, %v2552_v48 }
 0x7ea   : >> { %v2573_v27 = vsel %vm2541_vm4, %v2514_v5, %v2557_v18  ;;  %vm2542_vm10 = vcmp.gt.f32.partialorder %v2516_v25, 0.0  ;;  %v2558_v53 = vmul.f32 0.2, %v2516_v25  ;;  %2586 = vst [vmem:[%s3896_s23 + $0x18] sm:$0xff] %v2568_v30 }
 0x7eb   : >> { %2591 = vst [vmem:[%s3896_s23 + $0x40] sm:$0xff] %v2573_v27  ;;  %v2518_v51 = vpop.f32.mrf.mxu1 }
 0x7ec   : >> { %v2574_v21 = vsel %vm2542_vm10, %v2516_v25, %v2558_v53  ;;  %vm2543_vm14 = vcmp.gt.f32.partialorder %v2518_v51, 0.0  ;;  %v2559_v1 = vmul.f32 0.2, %v2518_v51 }
 0x7ed   : >> { %2592 = vst [vmem:[%s3896_s23 + $0x48] sm:$0xff] %v2574_v21  ;;  %v2520_v58 = vpop.f32.mrf.mxu1 }
 0x7ee   : >> { %v2575_v29 = vsel %vm2543_vm14, %v2518_v51, %v2559_v1  ;;  %vm2544_vm11 = vcmp.gt.f32.partialorder %v2520_v58, 0.0  ;;  %v2560_v35 = vmul.f32 0.2, %v2520_v58 }
 0x7ef   : >> { %2593 = vst [vmem:[%s3896_s23 + $0x50] sm:$0xff] %v2575_v29  ;;  %v2524_v26 = vpop.f32.mrf.mxu1 }
 0x7f0   : >> { %v2576_v39 = vsel %vm2544_vm11, %v2520_v58, %v2560_v35  ;;  %vm2545_vm5 = vcmp.gt.f32.partialorder %v2524_v26, 0.0  ;;  %v2561_v56 = vmul.f32 0.2, %v2524_v26 }
 0x7f1   : >> { %2594 = vst [vmem:[%s3896_s23 + $0x58] sm:$0xff] %v2576_v39  ;;  %v2526_v15 = vpop.f32.mrf.mxu1 }
 0x7f2   : >> { %v2577_v55 = vsel %vm2545_vm5, %v2524_v26, %v2561_v56  ;;  %vm2546_vm0 = vcmp.gt.f32.partialorder %v2526_v15, 0.0  ;;  %v2562_v41 = vmul.f32 0.2, %v2526_v15 }
 0x7f3   : >> { %2595 = vst [vmem:[%s3896_s23 + $0x60] sm:$0xff] %v2577_v55  ;;  %v2528_v50 = vpop.f32.mrf.mxu1 }
 0x7f4   : >> { %v2578_v36 = vsel %vm2546_vm0, %v2526_v15, %v2562_v41  ;;  %vm2547_vm1 = vcmp.gt.f32.partialorder %v2528_v50, 0.0  ;;  %v2563_v37 = vmul.f32 0.2, %v2528_v50 }
 0x7f5   : >> { %2596 = vst [vmem:[%s3896_s23 + $0x68] sm:$0xff] %v2578_v36  ;;  %v2530_v14 = vpop.f32.mrf.mxu1  ;;  %248 = sbr.rel (!%p246_p4) target bundleno = 20 (0x14), region = 78 }
 0x7f6   : >> { %v2579_v31 = vsel %vm2547_vm1, %v2528_v50, %v2563_v37  ;;  %vm2548_vm9 = vcmp.gt.f32.partialorder %v2530_v14, 0.0  ;;  %v2564_v46 = vmul.f32 0.2, %v2530_v14 }
 0x7f7   : >> { %2597 = vst [vmem:[%s3896_s23 + $0x70] sm:$0xff] %v2579_v31 }
 0x7f8   : >> { %v2580_v60 = vsel %vm2548_vm9, %v2530_v14, %v2564_v46 }
 0x7f9   : >> { %2598 = vst [vmem:[%s3896_s23 + $0x78] sm:$0xff] %v2580_v60 }
 0x7fa PF: > { %s14_s15 = sadd.s32 1, %s2912_s15  }
 0x7fb   : > { %p11_p5 = scmp.ge.s32.totalorder %s14_s15, 4  }
 0x7fd   :  { %13 = sbr.rel (!%p11_p5) target bundleno = 1 (0x1), region = 89 }

</bundles_post_ra>
